<compile_context>
chip_gen: v6e
topology: v6e:2x2x1
jax: 0.10.0
libtpu: 0.0.40
codegen_flags: <defaults>
</compile_context>

<pallas_src>
import functools
import math

import jax
import jax.numpy as jnp
from jax.experimental import pallas as pl
from jax.experimental.pallas import tpu as pltpu


_LN_EPS = 1e-5           # torch.nn.LayerNorm default
_MASK_FILL = -1.0e9      # masked_fill_ value in the PyTorch module


def _layer_norm(x, gamma, beta):
    mean = jnp.mean(x, axis=-1, keepdims=True)
    var = jnp.mean(jnp.square(x - mean), axis=-1, keepdims=True)
    return (x - mean) * jax.lax.rsqrt(var + _LN_EPS) * gamma + beta


def _gelu_tanh(x):
    # TODO(synk): torch.nn.GELU() defaults to the exact erf form; the tanh approximation
    # (max abs err ~1e-3) is used for a guaranteed Mosaic lowering. The in-script
    # reference uses the same approximation.
    c = math.sqrt(2.0 / math.pi)
    return 0.5 * x * (1.0 + jnp.tanh(c * (x + 0.044715 * (x * x * x))))


def encoder_kernel(x_ref, mask_ref, wqkv_ref, bqkv_ref, wo_ref,
                   w1_ref, b1_ref, w2_ref, vecs_ref, out_ref,
                   *, num_heads, dim_out, compute_dtype):
    bt, s, d_in = x_ref.shape
    h_do = num_heads * dim_out
    m = bt * s

    # Fold batch into the M dimension for all dense matmuls (denser sublanes).
    x2d = x_ref[...].reshape(m, d_in).astype(compute_dtype)

    # Single fused QKV projection: one large-N MXU matmul, f32 accumulation.
    qkv = jnp.dot(x2d, wqkv_ref[...],
                  preferred_element_type=jnp.float32) + bqkv_ref[...]

    # PyTorch module scales by sqrt(query.size(1)) == sqrt(seq_len); fold once into q.
    inv_scale = 1.0 / (float(s) ** 0.5)
    q = (qkv[:, :h_do] * inv_scale).reshape(bt, s, h_do).astype(compute_dtype)
    k = qkv[:, h_do:2 * h_do].reshape(bt, s, h_do).astype(compute_dtype)
    v = qkv[:, 2 * h_do:].reshape(bt, s, h_do).astype(compute_dtype)

    # Boolean mask rebuilt once from the int8 input and hoisted out of the head loop;
    # masked_fill_ (replacement) semantics preserved, incl. uniform softmax on
    # fully-masked rows.
    mask_bool = mask_ref[...] != 0                         # (bt, s, s)

    ctxs = []
    for h in range(num_heads):                             # small static loop, unrolled
        lo = h * dim_out
        qh = q[:, :, lo:lo + dim_out]
        kh = k[:, :, lo:lo + dim_out]
        vh = v[:, :, lo:lo + dim_out]
        scores = jnp.einsum("bqd,bkd->bqk", qh, kh,
                            preferred_element_type=jnp.float32)     # f32 (bt, s, s)
        scores = jnp.where(mask_bool, _MASK_FILL, scores)
        scores = scores - jnp.max(scores, axis=-1, keepdims=True)   # f32 softmax
        p = jnp.exp(scores)
        inv_denom = pl.reciprocal(jnp.sum(p, axis=-1, keepdims=True), approx=True)
        attn = (p * inv_denom).astype(compute_dtype)
        ctxs.append(jnp.einsum("bqk,bkd->bqd", attn, vh,
                               preferred_element_type=jnp.float32))

    # One large-K output projection instead of H small-K accumulating matmuls.
    ctx = jnp.concatenate(ctxs, axis=-1).reshape(m, h_do).astype(compute_dtype)

    vecs = vecs_ref[...]                                   # (6, d_in) f32
    bo, ln1_g, ln1_b = vecs[0:1], vecs[1:2], vecs[2:3]
    b2, ln2_g, ln2_b = vecs[3:4], vecs[4:5], vecs[5:6]

    proj = jnp.dot(ctx, wo_ref[...], preferred_element_type=jnp.float32) + bo
    y = _layer_norm(proj, ln1_g, ln1_b)                    # f32 statistics

    # Feed-forward: Linear -> Dropout(identity, eval) -> GELU -> Linear -> Dropout(id.).
    h1 = jnp.dot(y.astype(compute_dtype), w1_ref[...],
                 preferred_element_type=jnp.float32) + b1_ref[...]
    h1 = _gelu_tanh(h1)
    h2 = jnp.dot(h1.astype(compute_dtype), w2_ref[...],
                 preferred_element_type=jnp.float32) + b2
    out = _layer_norm(h2, ln2_g, ln2_b)

    out_ref[...] = out.reshape(bt, s, d_in).astype(out_ref.dtype)


def encoder_forward(x, attention_mask, params, *, num_heads, dim_out,
                    block_batch=None, compute_dtype=jnp.bfloat16):
    """x: f32[B,S,D_in]; attention_mask: bool[B,S,S] (True = masked key position)."""
    b, s, d_in = x.shape
    h_do = num_heads * dim_out
    d_ff = params["w1"].shape[1]

    if block_batch is None:
        block_batch = b            # small batches: whole batch in one grid step
    assert b % block_batch == 0, (b, block_batch)
    grid = (b // block_batch,)

    # Mask shipped as int8 (not f32): 4x less HBM traffic / VMEM per grid step.
    mask_i8 = attention_mask.astype(jnp.int8)

    # bf16 MXU operands (f32 accumulation in-kernel): halves weight DMA / VMEM.
    wqkv = jnp.concatenate([params["wq"], params["wk"], params["wv"]],
                           axis=1).astype(compute_dtype)           # (D_in, 3*H*Do)
    bqkv = jnp.concatenate([params["bq"], params["bk"], params["bv"]], axis=1)  # f32
    wo = params["wo"].astype(compute_dtype)
    w1 = params["w1"].astype(compute_dtype)
    w2 = params["w2"].astype(compute_dtype)
    b1 = params["b1"]
    # Pack the six (1, D_in) bias/LayerNorm vectors into one input array (fewer
    # per-step DMA descriptors on the vector-misc slot).
    vecs = jnp.concatenate([params["bo"], params["ln1_g"], params["ln1_b"],
                            params["b2"], params["ln2_g"], params["ln2_b"]], axis=0)

    batched = lambda shape: pl.BlockSpec(shape, lambda i: (i, 0, 0))  # per-batch blocks
    rep = lambda shape: pl.BlockSpec(shape, lambda i: (0, 0))         # replicated params

    in_specs = [
        batched((block_batch, s, d_in)),            # x
        batched((block_batch, s, s)),               # mask (int8)
        rep((d_in, 3 * h_do)), rep((1, 3 * h_do)),  # wqkv, bqkv
        rep((h_do, d_in)),                          # wo
        rep((d_in, d_ff)), rep((1, d_ff)),          # w1, b1
        rep((d_ff, d_in)),                          # w2
        rep((6, d_in)),                             # bo / ln1 / b2 / ln2 packed
    ]

    # Advisory cost estimate (MXU-dominated).
    flops = b * (2 * s * d_in * 3 * h_do               # fused QKV projection
                 + num_heads * 4 * s * s * dim_out     # scores + attn @ v
                 + 2 * s * h_do * d_in                 # output projection
                 + 4 * s * d_in * d_ff)                # feed-forward
    transcendentals = b * (num_heads * s * s + s * d_ff)
    bytes_accessed = (8 * b * s * d_in + b * s * s
                      + 2 * (3 * d_in * h_do + h_do * d_in + 2 * d_in * d_ff)
                      + 4 * (3 * h_do + d_ff + 6 * d_in))

    kernel = functools.partial(encoder_kernel, num_heads=num_heads,
                               dim_out=dim_out, compute_dtype=compute_dtype)

    return pl.pallas_call(
        kernel,
        out_shape=jax.ShapeDtypeStruct((b, s, d_in), jnp.float32),
        grid=grid,
        in_specs=in_specs,
        out_specs=pl.BlockSpec((block_batch, s, d_in), lambda i: (i, 0, 0)),
        compiler_params=pltpu.CompilerParams(
            dimension_semantics=("parallel",),              # megacore / 2-TC sharding
            # Sized for the fused working set; stays under v7x's 64 MiB physical VMEM.
            vmem_limit_bytes=48 * 1024 * 1024),
        cost_estimate=pl.CostEstimate(
            flops=int(flops), transcendentals=int(transcendentals),
            bytes_accessed=int(bytes_accessed)),
    )(x, mask_i8, wqkv, bqkv, wo, w1, b1, w2, vecs)


def reference(x, attention_mask, params, *, num_heads, dim_out):
    """Pure-JAX f32 reference matching the PyTorch Encoder forward (eval mode)."""
    s = x.shape[1]
    q = jnp.einsum("bsd,df->bsf", x, params["wq"]) + params["bq"][0]
    k = jnp.einsum("bsd,df->bsf", x, params["wk"]) + params["bk"][0]
    v = jnp.einsum("bsd,df->bsf", x, params["wv"]) + params["bv"][0]
    ctxs = []
    for h in range(num_heads):
        lo = h * dim_out
        qh, kh, vh = (q[..., lo:lo + dim_out], k[..., lo:lo + dim_out],
                      v[..., lo:lo + dim_out])
        scores = jnp.einsum("bqd,bkd->bqk", qh, kh) / (s ** 0.5)
        scores = jnp.where(attention_mask, _MASK_FILL, scores)
        attn = jax.nn.softmax(scores, axis=-1)
        ctxs.append(jnp.einsum("bqk,bkd->bqd", attn, vh))
    ctx = jnp.concatenate(ctxs, axis=-1)
    y = jnp.einsum("bsf,fd->bsd", ctx, params["wo"]) + params["bo"][0]
    y = _layer_norm(y, params["ln1_g"][0], params["ln1_b"][0])
    h1 = _gelu_tanh(jnp.einsum("bsd,df->bsf", y, params["w1"]) + params["b1"][0])
    h2 = jnp.einsum("bsf,fd->bsd", h1, params["w2"]) + params["b2"][0]
    return _layer_norm(h2, params["ln2_g"][0], params["ln2_b"][0])


if __name__ == "__main__":
    dim_inp, dim_out, num_heads = 32, 16, 4
    batch, seq = 2, 8

    key = jax.random.PRNGKey(0)
    keys = jax.random.split(key, 8)

    def linear_init(k, fan_in, fan_out):
        kw, kb = jax.random.split(k)
        bound = 1.0 / math.sqrt(fan_in)
        w = jax.random.uniform(kw, (fan_in, fan_out), jnp.float32, -bound, bound)
        b = jax.random.uniform(kb, (1, fan_out), jnp.float32, -bound, bound)
        return w, b

    h_do = num_heads * dim_out
    wq, bq = linear_init(keys[0], dim_inp, h_do)
    wk, bk = linear_init(keys[1], dim_inp, h_do)
    wv, bv = linear_init(keys[2], dim_inp, h_do)
    wo, bo = linear_init(keys[3], h_do, dim_inp)
    w1, b1 = linear_init(keys[4], dim_inp, dim_out)   # FFN hidden == dim_out per spec
    w2, b2 = linear_init(keys[5], dim_out, dim_inp)

    params = dict(
        wq=wq, bq=bq, wk=wk, bk=bk, wv=wv, bv=bv, wo=wo, bo=bo,
        ln1_g=jnp.ones((1, dim_inp), jnp.float32),
        ln1_b=jnp.zeros((1, dim_inp), jnp.float32),
        w1=w1, b1=b1, w2=w2, b2=b2,
        ln2_g=jnp.ones((1, dim_inp), jnp.float32),
        ln2_b=jnp.zeros((1, dim_inp), jnp.float32),
    )

    x = jax.random.normal(keys[6], (batch, seq, dim_inp), jnp.float32)
    # Padding-style mask: True = masked key position.
    valid_len = jnp.array([seq, seq - 2], jnp.int32)
    attention_mask = jnp.broadcast_to(
        jnp.arange(seq)[None, None, :] >= valid_len[:, None, None],
        (batch, seq, seq))

    out = encoder_forward(x, attention_mask, params,
                          num_heads=num_heads, dim_out=dim_out)
    out = jax.block_until_ready(out)

    ref = reference(x, attention_mask, params,
                    num_heads=num_heads, dim_out=dim_out)
    assert out.shape == (batch, seq, dim_inp)
    max_err = float(jnp.max(jnp.abs(out - ref)))
    # bf16 MXU operands vs. f32 reference: tolerance sized for bf16 rounding.
    assert max_err < 3e-2, max_err

    print("KERNEL_OK")
</pallas_src>

<mosaic_0001>
module attributes {stable_mosaic.version = 11 : i64} {
  func.func @encoder_kernel(%arg0: i32, %arg1: memref<2x8x32xf32, #tpu.memory_space<vmem>>, %arg2: memref<2x8x8xi8, #tpu.memory_space<vmem>>, %arg3: memref<32x192xbf16, #tpu.memory_space<vmem>>, %arg4: memref<1x192xf32, #tpu.memory_space<vmem>>, %arg5: memref<64x32xbf16, #tpu.memory_space<vmem>>, %arg6: memref<32x16xbf16, #tpu.memory_space<vmem>>, %arg7: memref<1x16xf32, #tpu.memory_space<vmem>>, %arg8: memref<16x32xbf16, #tpu.memory_space<vmem>>, %arg9: memref<6x32xf32, #tpu.memory_space<vmem>>, %arg10: memref<2x8x32xf32, #tpu.memory_space<vmem>>) attributes {dimension_semantics = [#tpu.dimension_semantics<parallel>], iteration_bounds = array<i64: 1>, scalar_prefetch = 0 : i64, scratch_operands = 0 : i64, tpu.core_type = #tpu.core_type<tc>, window_params = [{transform_indices = @transform_0, window_bounds = array<i64: 2, 8, 32>}, {transform_indices = @transform_1, window_bounds = array<i64: 2, 8, 8>}, {pipeline_mode = #tpu.pipeline_mode<synchronous>, transform_indices = @transform_2, window_bounds = array<i64: 32, 192>}, {pipeline_mode = #tpu.pipeline_mode<synchronous>, transform_indices = @transform_3, window_bounds = array<i64: 1, 192>}, {pipeline_mode = #tpu.pipeline_mode<synchronous>, transform_indices = @transform_4, window_bounds = array<i64: 64, 32>}, {pipeline_mode = #tpu.pipeline_mode<synchronous>, transform_indices = @transform_5, window_bounds = array<i64: 32, 16>}, {pipeline_mode = #tpu.pipeline_mode<synchronous>, transform_indices = @transform_6, window_bounds = array<i64: 1, 16>}, {pipeline_mode = #tpu.pipeline_mode<synchronous>, transform_indices = @transform_7, window_bounds = array<i64: 16, 32>}, {pipeline_mode = #tpu.pipeline_mode<synchronous>, transform_indices = @transform_8, window_bounds = array<i64: 6, 32>}, {transform_indices = @transform_9, window_bounds = array<i64: 2, 8, 32>}]} {
    %c0 = arith.constant 0 : index
    %c0_0 = arith.constant 0 : index
    %c0_1 = arith.constant 0 : index
    %0 = vector.load %arg1[%c0, %c0_0, %c0_1] : memref<2x8x32xf32, #tpu.memory_space<vmem>>, vector<2x8x32xf32>
    %1 = vector.shape_cast %0 : vector<2x8x32xf32> to vector<16x32xf32>
    %2 = arith.truncf %1 : vector<16x32xf32> to vector<16x32xbf16>
    %c0_2 = arith.constant 0 : index
    %c0_3 = arith.constant 0 : index
    %3 = vector.load %arg3[%c0_2, %c0_3] : memref<32x192xbf16, #tpu.memory_space<vmem>>, vector<32x192xbf16>
    %cst = arith.constant dense<0.000000e+00> : vector<16x192xf32>
    %4 = tpu.matmul %2, %3, %cst {dimension_numbers = #tpu.dot_dimension_numbers<[1], [0], [0], [1], [0, 0, 1, 1], [], []>} : vector<16x32xbf16>, vector<32x192xbf16>, vector<16x192xf32> -> vector<16x192xf32>
    %c0_4 = arith.constant 0 : index
    %c0_5 = arith.constant 0 : index
    %5 = vector.load %arg4[%c0_4, %c0_5] : memref<1x192xf32, #tpu.memory_space<vmem>>, vector<1x192xf32>
    %6 = vector.broadcast %5 : vector<1x192xf32> to vector<16x192xf32>
    %7 = arith.addf %4, %6 : vector<16x192xf32>
    %8 = vector.extract_strided_slice %7 {offsets = [0, 0], sizes = [16, 64], strides = [1, 1]} : vector<16x192xf32> to vector<16x64xf32>
    %cst_6 = arith.constant 0.353553385 : f32
    %9 = vector.broadcast %cst_6 : f32 to vector<16x64xf32>
    %10 = arith.mulf %8, %9 : vector<16x64xf32>
    %11 = vector.shape_cast %10 : vector<16x64xf32> to vector<2x8x64xf32>
    %12 = arith.truncf %11 : vector<2x8x64xf32> to vector<2x8x64xbf16>
    %13 = vector.extract_strided_slice %7 {offsets = [0, 64], sizes = [16, 64], strides = [1, 1]} : vector<16x192xf32> to vector<16x64xf32>
    %14 = vector.shape_cast %13 : vector<16x64xf32> to vector<2x8x64xf32>
    %15 = arith.truncf %14 : vector<2x8x64xf32> to vector<2x8x64xbf16>
    %16 = vector.extract_strided_slice %7 {offsets = [0, 128], sizes = [16, 64], strides = [1, 1]} : vector<16x192xf32> to vector<16x64xf32>
    %17 = vector.shape_cast %16 : vector<16x64xf32> to vector<2x8x64xf32>
    %18 = arith.truncf %17 : vector<2x8x64xf32> to vector<2x8x64xbf16>
    %c0_7 = arith.constant 0 : index
    %c0_8 = arith.constant 0 : index
    %c0_9 = arith.constant 0 : index
    %19 = vector.load %arg2[%c0_7, %c0_8, %c0_9] : memref<2x8x8xi8, #tpu.memory_space<vmem>>, vector<2x8x8xi8>
    %c0_i8 = arith.constant 0 : i8
    %20 = vector.broadcast %c0_i8 : i8 to vector<2x8x8xi8>
    %21 = arith.cmpi ne, %19, %20 : vector<2x8x8xi8>
    %22 = vector.extract_strided_slice %12 {offsets = [0, 0, 0], sizes = [2, 8, 16], strides = [1, 1, 1]} : vector<2x8x64xbf16> to vector<2x8x16xbf16>
    %23 = vector.extract_strided_slice %15 {offsets = [0, 0, 0], sizes = [2, 8, 16], strides = [1, 1, 1]} : vector<2x8x64xbf16> to vector<2x8x16xbf16>
    %24 = vector.extract_strided_slice %18 {offsets = [0, 0, 0], sizes = [2, 8, 16], strides = [1, 1, 1]} : vector<2x8x64xbf16> to vector<2x8x16xbf16>
    "tpu.trace_start"() <{level = 10 : i32, message = "bqd,bkd->bqk"}> : () -> ()
    %cst_10 = arith.constant dense<0.000000e+00> : vector<2x8x8xf32>
    %25 = tpu.matmul %22, %23, %cst_10 {dimension_numbers = #tpu.dot_dimension_numbers<[2], [2], [1], [1], [0, 0, 0, 1, 1, 1], [0], [0]>} : vector<2x8x16xbf16>, vector<2x8x16xbf16>, vector<2x8x8xf32> -> vector<2x8x8xf32>
    %cst_11 = arith.constant -1.000000e+09 : f32
    "tpu.trace_stop"() : () -> ()
    %26 = vector.broadcast %cst_11 : f32 to vector<2x8x8xf32>
    %27 = arith.select %21, %26, %25 : vector<2x8x8xi1>, vector<2x8x8xf32>
    %cst_12 = arith.constant dense<0xFF800000> : vector<2x8xf32>
    %28 = vector.multi_reduction <maximumf>, %27, %cst_12 [2] : vector<2x8x8xf32> to vector<2x8xf32>
    %29 = vector.shape_cast %28 : vector<2x8xf32> to vector<2x8x1xf32>
    %30 = vector.broadcast %29 : vector<2x8x1xf32> to vector<2x8x8xf32>
    %31 = arith.subf %27, %30 : vector<2x8x8xf32>
    %32 = math.exp %31 : vector<2x8x8xf32>
    %cst_13 = arith.constant dense<0.000000e+00> : vector<2x8xf32>
    %33 = vector.multi_reduction <add>, %32, %cst_13 [2] : vector<2x8x8xf32> to vector<2x8xf32>
    %34 = vector.shape_cast %33 : vector<2x8xf32> to vector<2x8x1xf32>
    %35 = tpu.reciprocal %34 {approx = true} : vector<2x8x1xf32> -> vector<2x8x1xf32>
    %36 = vector.broadcast %35 : vector<2x8x1xf32> to vector<2x8x8xf32>
    %37 = arith.mulf %32, %36 : vector<2x8x8xf32>
    %38 = arith.truncf %37 : vector<2x8x8xf32> to vector<2x8x8xbf16>
    "tpu.trace_start"() <{level = 10 : i32, message = "bqk,bkd->bqd"}> : () -> ()
    %cst_14 = arith.constant dense<0.000000e+00> : vector<2x8x16xf32>
    %39 = tpu.matmul %38, %24, %cst_14 {dimension_numbers = #tpu.dot_dimension_numbers<[2], [1], [1], [2], [0, 0, 0, 1, 1, 2], [0], [0]>} : vector<2x8x8xbf16>, vector<2x8x16xbf16>, vector<2x8x16xf32> -> vector<2x8x16xf32>
    "tpu.trace_stop"() : () -> ()
    %40 = vector.extract_strided_slice %12 {offsets = [0, 0, 16], sizes = [2, 8, 16], strides = [1, 1, 1]} : vector<2x8x64xbf16> to vector<2x8x16xbf16>
    %41 = vector.extract_strided_slice %15 {offsets = [0, 0, 16], sizes = [2, 8, 16], strides = [1, 1, 1]} : vector<2x8x64xbf16> to vector<2x8x16xbf16>
    %42 = vector.extract_strided_slice %18 {offsets = [0, 0, 16], sizes = [2, 8, 16], strides = [1, 1, 1]} : vector<2x8x64xbf16> to vector<2x8x16xbf16>
    "tpu.trace_start"() <{level = 10 : i32, message = "bqd,bkd->bqk"}> : () -> ()
    %cst_15 = arith.constant dense<0.000000e+00> : vector<2x8x8xf32>
    %43 = tpu.matmul %40, %41, %cst_15 {dimension_numbers = #tpu.dot_dimension_numbers<[2], [2], [1], [1], [0, 0, 0, 1, 1, 1], [0], [0]>} : vector<2x8x16xbf16>, vector<2x8x16xbf16>, vector<2x8x8xf32> -> vector<2x8x8xf32>
    %cst_16 = arith.constant -1.000000e+09 : f32
    "tpu.trace_stop"() : () -> ()
    %44 = vector.broadcast %cst_16 : f32 to vector<2x8x8xf32>
    %45 = arith.select %21, %44, %43 : vector<2x8x8xi1>, vector<2x8x8xf32>
    %cst_17 = arith.constant dense<0xFF800000> : vector<2x8xf32>
    %46 = vector.multi_reduction <maximumf>, %45, %cst_17 [2] : vector<2x8x8xf32> to vector<2x8xf32>
    %47 = vector.shape_cast %46 : vector<2x8xf32> to vector<2x8x1xf32>
    %48 = vector.broadcast %47 : vector<2x8x1xf32> to vector<2x8x8xf32>
    %49 = arith.subf %45, %48 : vector<2x8x8xf32>
    %50 = math.exp %49 : vector<2x8x8xf32>
    %cst_18 = arith.constant dense<0.000000e+00> : vector<2x8xf32>
    %51 = vector.multi_reduction <add>, %50, %cst_18 [2] : vector<2x8x8xf32> to vector<2x8xf32>
    %52 = vector.shape_cast %51 : vector<2x8xf32> to vector<2x8x1xf32>
    %53 = tpu.reciprocal %52 {approx = true} : vector<2x8x1xf32> -> vector<2x8x1xf32>
    %54 = vector.broadcast %53 : vector<2x8x1xf32> to vector<2x8x8xf32>
    %55 = arith.mulf %50, %54 : vector<2x8x8xf32>
    %56 = arith.truncf %55 : vector<2x8x8xf32> to vector<2x8x8xbf16>
    "tpu.trace_start"() <{level = 10 : i32, message = "bqk,bkd->bqd"}> : () -> ()
    %cst_19 = arith.constant dense<0.000000e+00> : vector<2x8x16xf32>
    %57 = tpu.matmul %56, %42, %cst_19 {dimension_numbers = #tpu.dot_dimension_numbers<[2], [1], [1], [2], [0, 0, 0, 1, 1, 2], [0], [0]>} : vector<2x8x8xbf16>, vector<2x8x16xbf16>, vector<2x8x16xf32> -> vector<2x8x16xf32>
    "tpu.trace_stop"() : () -> ()
    %58 = vector.extract_strided_slice %12 {offsets = [0, 0, 32], sizes = [2, 8, 16], strides = [1, 1, 1]} : vector<2x8x64xbf16> to vector<2x8x16xbf16>
    %59 = vector.extract_strided_slice %15 {offsets = [0, 0, 32], sizes = [2, 8, 16], strides = [1, 1, 1]} : vector<2x8x64xbf16> to vector<2x8x16xbf16>
    %60 = vector.extract_strided_slice %18 {offsets = [0, 0, 32], sizes = [2, 8, 16], strides = [1, 1, 1]} : vector<2x8x64xbf16> to vector<2x8x16xbf16>
    "tpu.trace_start"() <{level = 10 : i32, message = "bqd,bkd->bqk"}> : () -> ()
    %cst_20 = arith.constant dense<0.000000e+00> : vector<2x8x8xf32>
    %61 = tpu.matmul %58, %59, %cst_20 {dimension_numbers = #tpu.dot_dimension_numbers<[2], [2], [1], [1], [0, 0, 0, 1, 1, 1], [0], [0]>} : vector<2x8x16xbf16>, vector<2x8x16xbf16>, vector<2x8x8xf32> -> vector<2x8x8xf32>
    %cst_21 = arith.constant -1.000000e+09 : f32
    "tpu.trace_stop"() : () -> ()
    %62 = vector.broadcast %cst_21 : f32 to vector<2x8x8xf32>
    %63 = arith.select %21, %62, %61 : vector<2x8x8xi1>, vector<2x8x8xf32>
    %cst_22 = arith.constant dense<0xFF800000> : vector<2x8xf32>
    %64 = vector.multi_reduction <maximumf>, %63, %cst_22 [2] : vector<2x8x8xf32> to vector<2x8xf32>
    %65 = vector.shape_cast %64 : vector<2x8xf32> to vector<2x8x1xf32>
    %66 = vector.broadcast %65 : vector<2x8x1xf32> to vector<2x8x8xf32>
    %67 = arith.subf %63, %66 : vector<2x8x8xf32>
    %68 = math.exp %67 : vector<2x8x8xf32>
    %cst_23 = arith.constant dense<0.000000e+00> : vector<2x8xf32>
    %69 = vector.multi_reduction <add>, %68, %cst_23 [2] : vector<2x8x8xf32> to vector<2x8xf32>
    %70 = vector.shape_cast %69 : vector<2x8xf32> to vector<2x8x1xf32>
    %71 = tpu.reciprocal %70 {approx = true} : vector<2x8x1xf32> -> vector<2x8x1xf32>
    %72 = vector.broadcast %71 : vector<2x8x1xf32> to vector<2x8x8xf32>
    %73 = arith.mulf %68, %72 : vector<2x8x8xf32>
    %74 = arith.truncf %73 : vector<2x8x8xf32> to vector<2x8x8xbf16>
    "tpu.trace_start"() <{level = 10 : i32, message = "bqk,bkd->bqd"}> : () -> ()
    %cst_24 = arith.constant dense<0.000000e+00> : vector<2x8x16xf32>
    %75 = tpu.matmul %74, %60, %cst_24 {dimension_numbers = #tpu.dot_dimension_numbers<[2], [1], [1], [2], [0, 0, 0, 1, 1, 2], [0], [0]>} : vector<2x8x8xbf16>, vector<2x8x16xbf16>, vector<2x8x16xf32> -> vector<2x8x16xf32>
    "tpu.trace_stop"() : () -> ()
    %76 = vector.extract_strided_slice %12 {offsets = [0, 0, 48], sizes = [2, 8, 16], strides = [1, 1, 1]} : vector<2x8x64xbf16> to vector<2x8x16xbf16>
    %77 = vector.extract_strided_slice %15 {offsets = [0, 0, 48], sizes = [2, 8, 16], strides = [1, 1, 1]} : vector<2x8x64xbf16> to vector<2x8x16xbf16>
    %78 = vector.extract_strided_slice %18 {offsets = [0, 0, 48], sizes = [2, 8, 16], strides = [1, 1, 1]} : vector<2x8x64xbf16> to vector<2x8x16xbf16>
    "tpu.trace_start"() <{level = 10 : i32, message = "bqd,bkd->bqk"}> : () -> ()
    %cst_25 = arith.constant dense<0.000000e+00> : vector<2x8x8xf32>
    %79 = tpu.matmul %76, %77, %cst_25 {dimension_numbers = #tpu.dot_dimension_numbers<[2], [2], [1], [1], [0, 0, 0, 1, 1, 1], [0], [0]>} : vector<2x8x16xbf16>, vector<2x8x16xbf16>, vector<2x8x8xf32> -> vector<2x8x8xf32>
    %cst_26 = arith.constant -1.000000e+09 : f32
    "tpu.trace_stop"() : () -> ()
    %80 = vector.broadcast %cst_26 : f32 to vector<2x8x8xf32>
    %81 = arith.select %21, %80, %79 : vector<2x8x8xi1>, vector<2x8x8xf32>
    %cst_27 = arith.constant dense<0xFF800000> : vector<2x8xf32>
    %82 = vector.multi_reduction <maximumf>, %81, %cst_27 [2] : vector<2x8x8xf32> to vector<2x8xf32>
    %83 = vector.shape_cast %82 : vector<2x8xf32> to vector<2x8x1xf32>
    %84 = vector.broadcast %83 : vector<2x8x1xf32> to vector<2x8x8xf32>
    %85 = arith.subf %81, %84 : vector<2x8x8xf32>
    %86 = math.exp %85 : vector<2x8x8xf32>
    %cst_28 = arith.constant dense<0.000000e+00> : vector<2x8xf32>
    %87 = vector.multi_reduction <add>, %86, %cst_28 [2] : vector<2x8x8xf32> to vector<2x8xf32>
    %88 = vector.shape_cast %87 : vector<2x8xf32> to vector<2x8x1xf32>
    %89 = tpu.reciprocal %88 {approx = true} : vector<2x8x1xf32> -> vector<2x8x1xf32>
    %90 = vector.broadcast %89 : vector<2x8x1xf32> to vector<2x8x8xf32>
    %91 = arith.mulf %86, %90 : vector<2x8x8xf32>
    %92 = arith.truncf %91 : vector<2x8x8xf32> to vector<2x8x8xbf16>
    "tpu.trace_start"() <{level = 10 : i32, message = "bqk,bkd->bqd"}> : () -> ()
    %cst_29 = arith.constant dense<0.000000e+00> : vector<2x8x16xf32>
    %93 = tpu.matmul %92, %78, %cst_29 {dimension_numbers = #tpu.dot_dimension_numbers<[2], [1], [1], [2], [0, 0, 0, 1, 1, 2], [0], [0]>} : vector<2x8x8xbf16>, vector<2x8x16xbf16>, vector<2x8x16xf32> -> vector<2x8x16xf32>
    "tpu.trace_stop"() : () -> ()
    %94 = tpu.concatenate %39, %57, %75, %93 in 2 : vector<2x8x16xf32>, vector<2x8x16xf32>, vector<2x8x16xf32>, vector<2x8x16xf32> -> vector<2x8x64xf32>
    %95 = vector.shape_cast %94 : vector<2x8x64xf32> to vector<16x64xf32>
    %96 = arith.truncf %95 : vector<16x64xf32> to vector<16x64xbf16>
    %c0_30 = arith.constant 0 : index
    %c0_31 = arith.constant 0 : index
    %97 = vector.load %arg9[%c0_30, %c0_31] : memref<6x32xf32, #tpu.memory_space<vmem>>, vector<6x32xf32>
    %98 = vector.extract_strided_slice %97 {offsets = [0, 0], sizes = [1, 32], strides = [1, 1]} : vector<6x32xf32> to vector<1x32xf32>
    %99 = vector.extract_strided_slice %97 {offsets = [1, 0], sizes = [1, 32], strides = [1, 1]} : vector<6x32xf32> to vector<1x32xf32>
    %100 = vector.extract_strided_slice %97 {offsets = [2, 0], sizes = [1, 32], strides = [1, 1]} : vector<6x32xf32> to vector<1x32xf32>
    %101 = vector.extract_strided_slice %97 {offsets = [3, 0], sizes = [1, 32], strides = [1, 1]} : vector<6x32xf32> to vector<1x32xf32>
    %102 = vector.extract_strided_slice %97 {offsets = [4, 0], sizes = [1, 32], strides = [1, 1]} : vector<6x32xf32> to vector<1x32xf32>
    %103 = vector.extract_strided_slice %97 {offsets = [5, 0], sizes = [1, 32], strides = [1, 1]} : vector<6x32xf32> to vector<1x32xf32>
    %c0_32 = arith.constant 0 : index
    %c0_33 = arith.constant 0 : index
    %104 = vector.load %arg5[%c0_32, %c0_33] : memref<64x32xbf16, #tpu.memory_space<vmem>>, vector<64x32xbf16>
    %cst_34 = arith.constant dense<0.000000e+00> : vector<16x32xf32>
    %105 = tpu.matmul %96, %104, %cst_34 {dimension_numbers = #tpu.dot_dimension_numbers<[1], [0], [0], [1], [0, 0, 1, 1], [], []>} : vector<16x64xbf16>, vector<64x32xbf16>, vector<16x32xf32> -> vector<16x32xf32>
    %106 = vector.broadcast %98 : vector<1x32xf32> to vector<16x32xf32>
    %107 = arith.addf %105, %106 : vector<16x32xf32>
    %cst_35 = arith.constant dense<0.000000e+00> : vector<16xf32>
    %108 = vector.multi_reduction <add>, %107, %cst_35 [1] : vector<16x32xf32> to vector<16xf32>
    %109 = vector.shape_cast %108 : vector<16xf32> to vector<16x1xf32>
    %cst_36 = arith.constant 3.200000e+01 : f32
    %110 = vector.broadcast %cst_36 : f32 to vector<16x1xf32>
    %111 = arith.divf %109, %110 : vector<16x1xf32>
    %112 = vector.broadcast %111 : vector<16x1xf32> to vector<16x32xf32>
    %113 = arith.subf %107, %112 : vector<16x32xf32>
    %114 = arith.mulf %113, %113 : vector<16x32xf32>
    %cst_37 = arith.constant dense<0.000000e+00> : vector<16xf32>
    %115 = vector.multi_reduction <add>, %114, %cst_37 [1] : vector<16x32xf32> to vector<16xf32>
    %116 = vector.shape_cast %115 : vector<16xf32> to vector<16x1xf32>
    %cst_38 = arith.constant 3.200000e+01 : f32
    %117 = vector.broadcast %cst_38 : f32 to vector<16x1xf32>
    %118 = arith.divf %116, %117 : vector<16x1xf32>
    %119 = vector.broadcast %111 : vector<16x1xf32> to vector<16x32xf32>
    %120 = arith.subf %107, %119 : vector<16x32xf32>
    %cst_39 = arith.constant 9.99999974E-6 : f32
    %121 = vector.broadcast %cst_39 : f32 to vector<16x1xf32>
    %122 = arith.addf %118, %121 : vector<16x1xf32>
    %123 = math.rsqrt %122 : vector<16x1xf32>
    %124 = vector.broadcast %123 : vector<16x1xf32> to vector<16x32xf32>
    %125 = arith.mulf %120, %124 : vector<16x32xf32>
    %126 = vector.broadcast %99 : vector<1x32xf32> to vector<16x32xf32>
    %127 = arith.mulf %125, %126 : vector<16x32xf32>
    %128 = vector.broadcast %100 : vector<1x32xf32> to vector<16x32xf32>
    %129 = arith.addf %127, %128 : vector<16x32xf32>
    %130 = arith.truncf %129 : vector<16x32xf32> to vector<16x32xbf16>
    %c0_40 = arith.constant 0 : index
    %c0_41 = arith.constant 0 : index
    %131 = vector.load %arg6[%c0_40, %c0_41] : memref<32x16xbf16, #tpu.memory_space<vmem>>, vector<32x16xbf16>
    %cst_42 = arith.constant dense<0.000000e+00> : vector<16x16xf32>
    %132 = tpu.matmul %130, %131, %cst_42 {dimension_numbers = #tpu.dot_dimension_numbers<[1], [0], [0], [1], [0, 0, 1, 1], [], []>} : vector<16x32xbf16>, vector<32x16xbf16>, vector<16x16xf32> -> vector<16x16xf32>
    %c0_43 = arith.constant 0 : index
    %c0_44 = arith.constant 0 : index
    %133 = vector.load %arg7[%c0_43, %c0_44] : memref<1x16xf32, #tpu.memory_space<vmem>>, vector<1x16xf32>
    %134 = vector.broadcast %133 : vector<1x16xf32> to vector<16x16xf32>
    %135 = arith.addf %132, %134 : vector<16x16xf32>
    %cst_45 = arith.constant 5.000000e-01 : f32
    %136 = vector.broadcast %cst_45 : f32 to vector<16x16xf32>
    %137 = arith.mulf %136, %135 : vector<16x16xf32>
    %138 = arith.mulf %135, %135 : vector<16x16xf32>
    %139 = arith.mulf %138, %135 : vector<16x16xf32>
    %cst_46 = arith.constant 4.471500e-02 : f32
    %140 = vector.broadcast %cst_46 : f32 to vector<16x16xf32>
    %141 = arith.mulf %140, %139 : vector<16x16xf32>
    %142 = arith.addf %135, %141 : vector<16x16xf32>
    %cst_47 = arith.constant 0.797884583 : f32
    %143 = vector.broadcast %cst_47 : f32 to vector<16x16xf32>
    %144 = arith.mulf %143, %142 : vector<16x16xf32>
    %145 = math.tanh %144 : vector<16x16xf32>
    %cst_48 = arith.constant 1.000000e+00 : f32
    %146 = vector.broadcast %cst_48 : f32 to vector<16x16xf32>
    %147 = arith.addf %146, %145 : vector<16x16xf32>
    %148 = arith.mulf %137, %147 : vector<16x16xf32>
    %149 = arith.truncf %148 : vector<16x16xf32> to vector<16x16xbf16>
    %c0_49 = arith.constant 0 : index
    %c0_50 = arith.constant 0 : index
    %150 = vector.load %arg8[%c0_49, %c0_50] : memref<16x32xbf16, #tpu.memory_space<vmem>>, vector<16x32xbf16>
    %cst_51 = arith.constant dense<0.000000e+00> : vector<16x32xf32>
    %151 = tpu.matmul %149, %150, %cst_51 {dimension_numbers = #tpu.dot_dimension_numbers<[1], [0], [0], [1], [0, 0, 1, 1], [], []>} : vector<16x16xbf16>, vector<16x32xbf16>, vector<16x32xf32> -> vector<16x32xf32>
    %152 = vector.broadcast %101 : vector<1x32xf32> to vector<16x32xf32>
    %153 = arith.addf %151, %152 : vector<16x32xf32>
    %cst_52 = arith.constant dense<0.000000e+00> : vector<16xf32>
    %154 = vector.multi_reduction <add>, %153, %cst_52 [1] : vector<16x32xf32> to vector<16xf32>
    %155 = vector.shape_cast %154 : vector<16xf32> to vector<16x1xf32>
    %cst_53 = arith.constant 3.200000e+01 : f32
    %156 = vector.broadcast %cst_53 : f32 to vector<16x1xf32>
    %157 = arith.divf %155, %156 : vector<16x1xf32>
    %158 = vector.broadcast %157 : vector<16x1xf32> to vector<16x32xf32>
    %159 = arith.subf %153, %158 : vector<16x32xf32>
    %160 = arith.mulf %159, %159 : vector<16x32xf32>
    %cst_54 = arith.constant dense<0.000000e+00> : vector<16xf32>
    %161 = vector.multi_reduction <add>, %160, %cst_54 [1] : vector<16x32xf32> to vector<16xf32>
    %162 = vector.shape_cast %161 : vector<16xf32> to vector<16x1xf32>
    %cst_55 = arith.constant 3.200000e+01 : f32
    %163 = vector.broadcast %cst_55 : f32 to vector<16x1xf32>
    %164 = arith.divf %162, %163 : vector<16x1xf32>
    %165 = vector.broadcast %157 : vector<16x1xf32> to vector<16x32xf32>
    %166 = arith.subf %153, %165 : vector<16x32xf32>
    %cst_56 = arith.constant 9.99999974E-6 : f32
    %167 = vector.broadcast %cst_56 : f32 to vector<16x1xf32>
    %168 = arith.addf %164, %167 : vector<16x1xf32>
    %169 = math.rsqrt %168 : vector<16x1xf32>
    %170 = vector.broadcast %169 : vector<16x1xf32> to vector<16x32xf32>
    %171 = arith.mulf %166, %170 : vector<16x32xf32>
    %172 = vector.broadcast %102 : vector<1x32xf32> to vector<16x32xf32>
    %173 = arith.mulf %171, %172 : vector<16x32xf32>
    %174 = vector.broadcast %103 : vector<1x32xf32> to vector<16x32xf32>
    %175 = arith.addf %173, %174 : vector<16x32xf32>
    %176 = vector.shape_cast %175 : vector<16x32xf32> to vector<2x8x32xf32>
    %c0_57 = arith.constant 0 : index
    %c0_58 = arith.constant 0 : index
    %c0_59 = arith.constant 0 : index
    %177 = vector.load %arg10[%c0_57, %c0_58, %c0_59] : memref<2x8x32xf32, #tpu.memory_space<vmem>>, vector<2x8x32xf32>
    tpu.vector_store %arg10[%c0_57, %c0_58, %c0_59], %176 {strides = array<i32>} : memref<2x8x32xf32, #tpu.memory_space<vmem>>, vector<2x8x32xf32>,
    return
  }
  func.func @transform_0(%arg0: i32) -> (i32, i32, i32) {
    %c0_i32 = arith.constant 0 : i32
    %c0_i32_0 = arith.constant 0 : i32
    %c0_i32_1 = arith.constant 0 : i32
    return %arg0, %c0_i32, %c0_i32_0 : i32, i32, i32
  }
  func.func @transform_1(%arg0: i32) -> (i32, i32, i32) {
    %c0_i32 = arith.constant 0 : i32
    %c0_i32_0 = arith.constant 0 : i32
    %c0_i32_1 = arith.constant 0 : i32
    return %arg0, %c0_i32, %c0_i32_0 : i32, i32, i32
  }
  func.func @transform_2(%arg0: i32) -> (i32, i32) {
    %c0_i32 = arith.constant 0 : i32
    %c0_i32_0 = arith.constant 0 : i32
    %c0_i32_1 = arith.constant 0 : i32
    return %c0_i32, %c0_i32_0 : i32, i32
  }
  func.func @transform_3(%arg0: i32) -> (i32, i32) {
    %c0_i32 = arith.constant 0 : i32
    %c0_i32_0 = arith.constant 0 : i32
    %c0_i32_1 = arith.constant 0 : i32
    return %c0_i32, %c0_i32_0 : i32, i32
  }
  func.func @transform_4(%arg0: i32) -> (i32, i32) {
    %c0_i32 = arith.constant 0 : i32
    %c0_i32_0 = arith.constant 0 : i32
    %c0_i32_1 = arith.constant 0 : i32
    return %c0_i32, %c0_i32_0 : i32, i32
  }
  func.func @transform_5(%arg0: i32) -> (i32, i32) {
    %c0_i32 = arith.constant 0 : i32
    %c0_i32_0 = arith.constant 0 : i32
    %c0_i32_1 = arith.constant 0 : i32
    return %c0_i32, %c0_i32_0 : i32, i32
  }
  func.func @transform_6(%arg0: i32) -> (i32, i32) {
    %c0_i32 = arith.constant 0 : i32
    %c0_i32_0 = arith.constant 0 : i32
    %c0_i32_1 = arith.constant 0 : i32
    return %c0_i32, %c0_i32_0 : i32, i32
  }
  func.func @transform_7(%arg0: i32) -> (i32, i32) {
    %c0_i32 = arith.constant 0 : i32
    %c0_i32_0 = arith.constant 0 : i32
    %c0_i32_1 = arith.constant 0 : i32
    return %c0_i32, %c0_i32_0 : i32, i32
  }
  func.func @transform_8(%arg0: i32) -> (i32, i32) {
    %c0_i32 = arith.constant 0 : i32
    %c0_i32_0 = arith.constant 0 : i32
    %c0_i32_1 = arith.constant 0 : i32
    return %c0_i32, %c0_i32_0 : i32, i32
  }
  func.func @transform_9(%arg0: i32) -> (i32, i32, i32) {
    %c0_i32 = arith.constant 0 : i32
    %c0_i32_0 = arith.constant 0 : i32
    %c0_i32_1 = arith.constant 0 : i32
    return %arg0, %c0_i32, %c0_i32_0 : i32, i32, i32
  }
}

</mosaic_0001>

<bundles_post_ra>
// kernel: tpu_custom_call.1
= control target key start
LH: loop header
LB: loop body
LE: loop exit
PB: predicated region body
PF: predicated region fallthrough
CT: control target
= control target key end

     0   :  { %14 = vsyncpa [#allocation3], 0  ;;  %s2163_s0 = inlined_call_operand.vmem [shape: f32[2,8,32], index: 0, kind: input, shape index: {}]   ;;  %s2164_s1 = inlined_call_operand.hbm [shape: s8[2,8,8], index: 1, kind: input, shape index: {}]   ;;  %s2165_s2 = inlined_call_operand.vmem [shape: bf16[32,192], index: 2, kind: input, shape index: {}]   ;;  %s2166_s3 = inlined_call_operand.hbm [shape: f32[1,192], index: 3, kind: input, shape index: {}]   ;;  %s2167_s4 = inlined_call_operand.vmem [shape: bf16[64,32], index: 4, kind: input, shape index: {}]   ;;  %s2168_s5 = inlined_call_operand.vmem [shape: bf16[32,16], index: 5, kind: input, shape index: {}]   ;;  %s2169_s6 = inlined_call_operand.vmem [shape: f32[1,16], index: 6, kind: input, shape index: {}]   ;;  %s2170_s7 = inlined_call_operand.vmem [shape: bf16[16,32], index: 7, kind: input, shape index: {}]   ;;  %s2171_s8 = inlined_call_operand.hbm [shape: f32[6,32], index: 8, kind: input, shape index: {}]   ;;  %s2172_s9 = inlined_call_operand.hbm [shape: f32[2,8,32], index: 9, kind: output, shape index: {}]  }
   0x1   :  { %15 = vsyncpa [#allocation6], 0 }
   0x2   :  { %16 = vsyncpa [#allocation4], 0  ;;  %s1791_s30 = smov [#allocation5]   ;;  %s1792_s11 = smov [#allocation2]  }
   0x3   :  { %s39_s10 = sshll.u32 %s1791_s30, 4  ;;  %s24_s12 = sshll.u32 %s1792_s11, 4  ;;  %s40_s10 = int_to_ptr.vmem [resolvable:$true] %s39_s10  ;;  %s25_s12 = int_to_ptr.vmem [resolvable:$true] %s24_s12 }
   0x4   :  { %s1713_s13 = scalar_lea.vmem %s40_s10, 32  ;;  %p1718_p1 = scmp.lt.s32.totalorder %s40_s10, %s40_s10 }
   0x5   :  { %p1714_p0 = scmp.ne.s32.totalorder %s40_s10, %s1713_s13  ;;  %p1719_p2 = scmp.lt.s32.totalorder %s1713_s13, %s1713_s13 }
   0x7   :  { %p1720_p3 = por %p1719_p2, %p1718_p1 }
   0x9   :  { %p1721_p4 = pnand %p1720_p3, %p1714_p0 }
   0xb   :  { %1724 = shalt.err (!%p1721_p4)
}
   0xc   :  { %42 = dma.hbm_to_vmem [thread:$0]  %s2166_s3, 32, %s40_s10, [#allocation6]  }
   0xd   :  { %s1733_s16 = scalar_lea.vmem %s25_s12, 64  ;;  %p1738_p6 = scmp.lt.s32.totalorder %s25_s12, %s25_s12 }
   0xe   :  { %p1734_p5 = scmp.ne.s32.totalorder %s25_s12, %s1733_s16  ;;  %p1739_p7 = scmp.lt.s32.totalorder %s1733_s16, %s1733_s16 }
  0x10   :  { %p1740_p8 = por %p1739_p7, %p1738_p6 }
  0x12   :  { %p1741_p9 = pnand %p1740_p8, %p1734_p5 }
  0x14   :  { %1744 = shalt.err (!%p1741_p9)
}
  0x15   :  { %s1793_s17 = smov 32   ;;  %s1794_s18 = smov 2  }
  0x16   :  { %30 = dma.hbm_to_vmem [thread:$0]  %s2164_s1, 64, %s25_s12, [#allocation3], %s1793_s17, %s1793_s17, %s1794_s18  }
  0x17   :  { %s1795_s21 = smov [#allocation7]  }
  0x18   :  { %s57_s22 = sshll.u32 %s1795_s21, 4  ;;  %s58_s22 = int_to_ptr.vmem [resolvable:$true] %s57_s22 }
  0x19   :  { %s1753_s23 = scalar_lea.vmem %s58_s22, 128  ;;  %p1758_p11 = scmp.lt.s32.totalorder %s58_s22, %s58_s22 }
  0x1a   :  { %p1754_p10 = scmp.ne.s32.totalorder %s58_s22, %s1753_s23  ;;  %p1759_p12 = scmp.lt.s32.totalorder %s1753_s23, %s1753_s23 }
  0x1c   :  { %p1760_p13 = por %p1759_p12, %p1758_p11 }
  0x1e   :  { %p1761_p0 = pnand %p1760_p13, %p1754_p10 }
  0x20   :  { %1764 = shalt.err (!%p1761_p0)
}
  0x21   :  { %60 = dma.hbm_to_vmem [thread:$0]  %s2171_s8, 128, %s58_s22, [#allocation6]  }
  0x22   :  { %1785 = dma.done.wait [#allocation3], 64  }
  0x23   :  { %1786 = vsyncadd [#allocation3], 4294967232 }
  0x24   :  { %1787 = dma.done.wait [#allocation6], 160  }
  0x25   :  { %1788 = vsyncadd [#allocation6], 4294967136  ;;  %v1796_v0 = vmov 0   ;;  %v1648_v1 = vld [vmem:[%s2165_s2 + $0x14] ss:$8 sps:$4 sm:$0xff]   ;;  %v73_v5 = vld [vmem:[%s2163_s0] sm:$0xff]  ;;  %v82_v8 = vlaneseq }
  0x26   :  { %148 = vmatprep.mubr.bf16.mxu0 %v1796_v0  ;;  %v1650_v2 = vld [vmem:[%s2165_s2 + $0x10] ss:$8 sps:$4 sm:$0xff]   ;;  %128 = vmatprep.subr.bf16.mxu0 %v1648_v1  ;;  %v1651_v3 = vld [vmem:[%s2165_s2 + $0x4] ss:$8 sps:$4 sm:$0xff]   ;;  %v1653_v4 = vld [vmem:[%s2165_s2] ss:$8 sps:$4 sm:$0xff]  }
  0x27   :  { %129 = vmatpush1.bf16.msra.mxu0 %v1650_v2  ;;  %v74_v6 = vld [vmem:[%s2163_s0 + $0x8] sm:$0xff]  ;;  %vm112_vm0 = vcmask 261120   ;;  %v1889_v9 = vshrl.u32 %v82_v8, 7  ;;  %v1797_v10 = vmov 0.0   ;;  %v80_v12 = vld [vmem:[#allocation5] sm:$0x3] }
  0x28   :  { %130 = vmatprep.subr.bf16.mxu0 %v1651_v3  ;;  %v75_v7 = vpack.c.bf16 %v74_v6, %v73_v5  ;;  %1494 = vmatprep.subr.bf16.mxu1 %v1797_v10  ;;  %vm1798_vm1 = vmmov 0   ;;  %s1799_s0 = smov 64   ;;  %vm174_vm2 = vcmask 130048   ;;  %vm306_vm3 = vcmask 1043456   ;;  %v167_v38 = vld [vmem:[#allocation2] sm:$0x3] }
  0x29   :  { %v84_v11 = vsub.s32 0, %v1889_v9  ;;  %1496 = vmatprep.mubr.msk.bf16.mxu1 %vm1798_vm1, %v1797_v10  ;;  %v88_v21 = vsub.s32 1, %v1889_v9  ;;  %vm169_vm4 = vnez %v167_v38  ;;  %v168_v39 = vld [vmem:[#allocation2 + $0x2] sm:$0x3]  ;;  %vm278_vm7 = vcmask 64512   ;;  %s1800_s2 = smov 48  }
  0x2a   :  { %v270_v40 = vsel %vm169_vm4, 16843009, %v1796_v0  ;;  %vm170_vm5 = vnez %v168_v39  ;;  %s1801_s14 = smov 112   ;;  %s1802_s15 = smov 96   ;;  %vm1094_vm9 = vcmask 392192   ;;  %vm1135_vm10 = vcmask 523264  }
  0x2b   :  { %131 = vmatpush1.bf16.msra.mxu0 %v1653_v4  ;;  %v85_v13 = vrot.slane %v80_v12, %v84_v11  ;;  %v89_v22 = vrot.slane %v80_v12, %v88_v21  ;;  %v272_v41 = vunpack.c.0.s8 %v270_v40  ;;  %v271_v42 = vsel %vm170_vm5, 16843009, %v1796_v0  ;;  %s1803_s16 = smov 16   ;;  %s1804_s18 = smov 80  }
  0x2c   :  { %1500 = vmatprep.subr.bf16.mxu0 %v1797_v10  ;;  %v273_v43 = vunpack.c.0.s8 %v271_v42 }
  0x2d   :  { %vm1937_vm6 = vcmp.ne.s32.totalorder %v272_v41, 0 }
  0x2e   :  { %1424 = vmatmul.mubr.msk.bf16.vlgmr.msra.gmra.mxu0 %vm112_vm0, %v75_v7  ;;  %vm1944_vm8 = vcmp.ne.s32.totalorder %v273_v43, 0 }
  0x2f   :  { %1502 = vmatprep.mubr.msk.bf16.mxu0 %vm1798_vm1, %v1797_v10 }
  0xee   :  { %v150_v14 = vpop.f32.mrf.mxu0 }
  0xef   :  { %v151_v15 = vadd.f32 %v150_v14, %v85_v13 }
  0xf0   :  { %v152_v16 = vpop.f32.mrf.mxu0 }
  0xf1   :  { %v1900_v17 = vpack.c.bf16 %v151_v15, %v151_v15  ;;  %v153_v24 = vadd.f32 %v152_v16, %v89_v22  ;;  %v159_v27 = vmul.f32 0.35355338, %v151_v15 }
  0xf2   :  { %v154_v18 = vpop.f32.mrf.mxu0 }
  0xf3   :  { %v155_v19 = vadd.f32 %v154_v18, %v85_v13  ;;  %172 = vrot.lane.b32.xlu0 %v1900_v17, %s1799_s0  ;;  %v1911_v29 = vpack.c.bf16 %v153_v24, %v153_v24  ;;  %v1914_v32 = vpack.c.bf16 %v159_v27, %v159_v27 }
  0xf4   :  { %v156_v26 = vpop.f32.mrf.mxu0 }
  0xf5   :  { %v1903_v20 = vpack.c.bf16 %v155_v19, %v155_v19  ;;  %v157_v30 = vadd.f32 %v156_v26, %v89_v22  ;;  %v160_v33 = vmul.f32 0.35355338, %v155_v19  ;;  %v308_v35 = vsel %vm306_vm3, %v1911_v29, 0 }
  0xf7   :  { %222 = vrot.lane.b32.xlu0 %v1903_v20, %s1799_s0  ;;  %v1917_v34 = vpack.c.bf16 %v157_v30, %v157_v30  ;;  %v1925_v36 = vpack.c.bf16 %v160_v33, %v160_v33 }
  0xf9   :  { %v354_v37 = vsel %vm306_vm3, %v1917_v34, 0 }
 0x165   :  { %v173_v23 = vpop.permute.xlu0 %172 }
 0x166   :  { %v179_v25 = vsel %vm174_vm2, %v173_v23, 0 }
 0x167   :  { %1495 = vmatpush3.bf16.xpose.msra.mxu1 %v179_v25 }
 0x168   :  { %1506 = vmatprep.subr.bf16.mxu1 %v1797_v10 }
 0x169   :  { %v223_v28 = vpop.permute.xlu0 %222 }
 0x16a   :  { %v228_v31 = vsel %vm174_vm2, %v223_v28, 0 }
 0x16b   :  { %1501 = vmatpush3.bf16.xpose.msra.mxu0 %v228_v31 }
 0x16c   :  { %1512 = vmatprep.subr.bf16.mxu0 %v1797_v10 }
 0x16e   :  { %1497 = vmatmul.mubr.msk.bf16.vlgmr.msra.gmra.mxu1 %vm174_vm2, %v1914_v32 }
 0x16f   :  { %1507 = vmatpush3.bf16.msra.mxu1 %v308_v35  ;;  %1508 = vmatprep.mubr.msk.bf16.mxu1 %vm1798_vm1, %v1797_v10 }
 0x170   :  { %1518 = vmatprep.subr.bf16.mxu1 %v1797_v10 }
 0x172   :  { %1503 = vmatmul.mubr.msk.bf16.vlgmr.msra.gmra.mxu0 %vm174_vm2, %v1925_v36 }
 0x173   :  { %1513 = vmatpush3.bf16.msra.mxu0 %v354_v37  ;;  %1514 = vmatprep.mubr.msk.bf16.mxu0 %vm1798_vm1, %v1797_v10 }
 0x174   :  { %1524 = vmatprep.subr.bf16.mxu0 %v1797_v10 }
 0x22e   :  { %v215_v45 = vpop.f32.mrf.mxu1 }
 0x22f   :  { %v276_v46 = vsel %vm1937_vm6, -1e+09, %v215_v45 }
 0x230   :  { %v1498_v47 = vpop.f32.mrf.mxu1  ;;  %v279_v48 = vsel %vm278_vm7, %v276_v46, -inf }
 0x231   :  { %280 = vmax.xlane.f32.xlu1 %v279_v48 }
 0x232   :  { %v218_v50 = vpop.f32.mrf.mxu1  ;;  %v264_v51 = vpop.f32.mrf.mxu0 }
 0x233   :  { %v277_v52 = vsel %vm1944_vm8, -1e+09, %v264_v51 }
 0x234   :  { %v1499_v53 = vpop.f32.mrf.mxu1  ;;  %v1504_v54 = vpop.f32.mrf.mxu0  ;;  %v282_v55 = vsel %vm278_vm7, %v277_v52, -inf }
 0x235   :  { %283 = vmax.xlane.f32.xlu1 %v282_v55 }
 0x236   :  { %v267_v56 = vpop.f32.mrf.mxu0 }
 0x238   :  { %v1505_v57 = vpop.f32.mrf.mxu0 }
 0x246   :  { %399 = vrot.lane.b32.xlu1 %v1900_v17, %s1800_s2 }
 0x24a   :  { %450 = vrot.lane.b32.xlu1 %v1903_v20, %s1800_s2 }
 0x2ba   :  { %v281_v58 = vpop.xlane.xlu1 %280 }
 0x2bb   :  { %v285_v59 = vsub.f32 %v276_v46, %v281_v58 }
 0x2bd   :  { %v287_v60 = vmul.f32 1.442695, %v285_v59 }
 0x2be   :  { %v284_v61 = vpop.xlane.xlu1 %283 }
 0x2bf   :  { %1661 = vpow2.f32 %v287_v60  ;;  %v286_v62 = vsub.f32 %v277_v52, %v284_v61 }
 0x2c1   :  { %v289_v63 = vmul.f32 1.442695, %v286_v62 }
 0x2c2   :  { %v400_v4 = vpop.permute.xlu1 %399 }
 0x2c3   :  { %1663 = vpow2.f32 %v289_v63  ;;  %v405_v15 = vsel %vm174_vm2, %v400_v4, 0 }
 0x2c6   :  { %v451_v5 = vpop.permute.xlu1 %450 }
 0x2c7   :  { %v456_v19 = vsel %vm174_vm2, %v451_v5, 0 }
 0x2cc   :  { %v1662_v0 = vpop.eup %1661 }
 0x2cd   :  { %v291_v1 = vsel %vm278_vm7, %v1662_v0, 0.0 }
 0x2ce   :  { %292 = vadd.xlane.f32.xlu0 %v291_v1 }
 0x2d0   :  { %v1664_v2 = vpop.eup %1663 }
 0x2d1   :  { %v294_v3 = vsel %vm278_vm7, %v1664_v2, 0.0 }
 0x2d2   :  { %295 = vadd.xlane.f32.xlu1 %v294_v3 }
 0x2e3   :  { %397 = vrot.lane.b32.xlu1 %v1914_v32, %s1801_s14 }
 0x2e7   :  { %448 = vrot.lane.b32.xlu1 %v1925_v36, %s1801_s14 }
 0x357   :  { %v293_v6 = vpop.xlane.xlu0 %292 }
 0x358   :  { %1665 = vrcp.f32 %v293_v6 }
 0x35b   :  { %v296_v7 = vpop.xlane.xlu1 %295 }
 0x35c   :  { %1667 = vrcp.f32 %v296_v7 }
 0x35f   :  { %v398_v22 = vpop.permute.xlu1 %397 }
 0x363   :  { %v449_v23 = vpop.permute.xlu1 %448 }
 0x365   :  { %v1666_v8 = vpop.eup %1665 }
 0x366   :  { %v299_v12 = vmul.f32 %v1666_v8, %v1662_v0 }
 0x368   :  { %v301_v13 = vpack.c.bf16 %v299_v12, %v299_v12 }
 0x369   :  { %v1668_v14 = vpop.eup %1667 }
 0x36a   :  { %1509 = vmatmul.mubr.msk.bf16.vlgmr.msra.gmra.mxu1 %vm278_vm7, %v301_v13  ;;  %v300_v16 = vmul.f32 %v1668_v14, %v1664_v2 }
 0x36b   :  { %1519 = vmatpush3.bf16.xpose.msra.mxu1 %v405_v15  ;;  %1520 = vmatprep.mubr.msk.bf16.mxu1 %vm1798_vm1, %v1797_v10 }
 0x36c   :  { %v302_v18 = vpack.c.bf16 %v300_v16, %v300_v16  ;;  %1530 = vmatprep.subr.bf16.mxu1 %v1797_v10 }
 0x36e   :  { %1515 = vmatmul.mubr.msk.bf16.vlgmr.msra.gmra.mxu0 %vm278_vm7, %v302_v18 }
 0x36f   :  { %1525 = vmatpush3.bf16.xpose.msra.mxu0 %v456_v19  ;;  %1526 = vmatprep.mubr.msk.bf16.mxu0 %vm1798_vm1, %v1797_v10 }
 0x370   :  { %1536 = vmatprep.subr.bf16.mxu0 %v1797_v10 }
 0x372   :  { %1521 = vmatmul.mubr.msk.bf16.vlgmr.msra.gmra.mxu1 %vm174_vm2, %v398_v22 }
 0x373   :  { %1532 = vmatprep.mubr.msk.bf16.mxu1 %vm1798_vm1, %v1797_v10 }
 0x376   :  { %1527 = vmatmul.mubr.msk.bf16.vlgmr.msra.gmra.mxu0 %vm174_vm2, %v449_v23 }
 0x377   :  { %1538 = vmatprep.mubr.msk.bf16.mxu0 %vm1798_vm1, %v1797_v10 }
 0x42a   :  { %v1977_v24 = vpop.f32.mrf.mxu1 }
 0x42c   :  { %v1510_v25 = vpop.f32.mrf.mxu1 }
 0x42e   :  { %v347_v26 = vpop.f32.mrf.mxu1  ;;  %v1979_v27 = vpop.f32.mrf.mxu0 }
 0x430   :  { %v1511_v28 = vpop.f32.mrf.mxu1  ;;  %v1516_v30 = vpop.f32.mrf.mxu0 }
 0x432   :  { %v393_v31 = vpop.f32.mrf.mxu0  ;;  %v441_v33 = vpop.f32.mrf.mxu1 }
 0x433   :  { %v498_v35 = vsel %vm1937_vm6, -1e+09, %v441_v33 }
 0x434   :  { %v1517_v37 = vpop.f32.mrf.mxu0  ;;  %v1522_v38 = vpop.f32.mrf.mxu1  ;;  %v500_v39 = vsel %vm278_vm7, %v498_v35, -inf }
 0x435   :  { %501 = vmax.xlane.f32.xlu0 %v500_v39 }
 0x436   :  { %v444_v40 = vpop.f32.mrf.mxu1  ;;  %v492_v41 = vpop.f32.mrf.mxu0 }
 0x437   :  { %v499_v42 = vsel %vm1944_vm8, -1e+09, %v492_v41 }
 0x438   :  { %v1523_v43 = vpop.f32.mrf.mxu1  ;;  %v1528_v45 = vpop.f32.mrf.mxu0  ;;  %v503_v46 = vsel %vm278_vm7, %v499_v42, -inf }
 0x439   :  { %504 = vmax.xlane.f32.xlu1 %v503_v46 }
 0x43a   :  { %v495_v47 = vpop.f32.mrf.mxu0 }
 0x43c   :  { %v1529_v48 = vpop.f32.mrf.mxu0 }
 0x44a   :  { %674 = vrot.lane.b32.xlu1 %v1903_v20, %s1793_s17 }
 0x44b   :  { %525 = vrot.lane.b32.xlu0 %v1911_v29, %s1801_s14 }
 0x44f   :  { %574 = vrot.lane.b32.xlu0 %v1917_v34, %s1801_s14 }
 0x4be   :  { %v502_v50 = vpop.xlane.xlu0 %501 }
 0x4bf   :  { %v506_v51 = vsub.f32 %v498_v35, %v502_v50 }
 0x4c1   :  { %v508_v52 = vmul.f32 1.442695, %v506_v51 }
 0x4c2   :  { %v505_v53 = vpop.xlane.xlu1 %504  ;;  %v526_v54 = vpop.permute.xlu0 %525 }
 0x4c3   :  { %1669 = vpow2.f32 %v508_v52  ;;  %v507_v55 = vsub.f32 %v499_v42, %v505_v53  ;;  %v531_v56 = vsel %vm306_vm3, %v526_v54, 0 }
 0x4c4   :  { %1531 = vmatpush3.bf16.msra.mxu1 %v531_v56 }
 0x4c5   :  { %v510_v57 = vmul.f32 1.442695, %v507_v55  ;;  %1542 = vmatprep.subr.bf16.mxu1 %v1797_v10 }
 0x4c6   :  { %v575_v58 = vpop.permute.xlu0 %574  ;;  %v675_v12 = vpop.permute.xlu1 %674 }
 0x4c7   :  { %1671 = vpow2.f32 %v510_v57  ;;  %v580_v59 = vsel %vm306_vm3, %v575_v58, 0  ;;  %v680_v14 = vsel %vm174_vm2, %v675_v12, 0 }
 0x4c8   :  { %1537 = vmatpush3.bf16.msra.mxu0 %v580_v59 }
 0x4c9   :  { %1548 = vmatprep.subr.bf16.mxu0 %v1797_v10 }
 0x4d0   :  { %v1670_v60 = vpop.eup %1669 }
 0x4d1   :  { %v512_v61 = vsel %vm278_vm7, %v1670_v60, 0.0 }
 0x4d2   :  { %513 = vadd.xlane.f32.xlu0 %v512_v61 }
 0x4d4   :  { %v1672_v62 = vpop.eup %1671 }
 0x4d5   :  { %v515_v63 = vsel %vm278_vm7, %v1672_v62, 0.0 }
 0x4d6   :  { %516 = vadd.xlane.f32.xlu0 %v515_v63 }
 0x4ec   :  { %624 = vrot.lane.b32.xlu0 %v1900_v17, %s1793_s17 }
 0x4f0   :  { %622 = vrot.lane.b32.xlu0 %v1914_v32, %s1802_s15 }
 0x4f4   :  { %672 = vrot.lane.b32.xlu0 %v1925_v36, %s1802_s15 }
 0x55b   :  { %v514_v0 = vpop.xlane.xlu0 %513 }
 0x55c   :  { %1673 = vrcp.f32 %v514_v0 }
 0x55f   :  { %v517_v1 = vpop.xlane.xlu0 %516 }
 0x560   :  { %1675 = vrcp.f32 %v517_v1 }
 0x563   :  { %v625_v4 = vpop.permute.xlu0 %624 }
 0x564   :  { %v630_v7 = vsel %vm174_vm2, %v625_v4, 0 }
 0x567   :  { %v623_v15 = vpop.permute.xlu0 %622 }
 0x569   :  { %v1674_v2 = vpop.eup %1673 }
 0x56a   :  { %v520_v3 = vmul.f32 %v1674_v2, %v1670_v60 }
 0x56b   :  { %v673_v16 = vpop.permute.xlu0 %672 }
 0x56c   :  { %v522_v5 = vpack.c.bf16 %v520_v3, %v520_v3 }
 0x56d   :  { %v1676_v6 = vpop.eup %1675 }
 0x56e   :  { %1533 = vmatmul.mubr.msk.bf16.vlgmr.msra.gmra.mxu1 %vm278_vm7, %v522_v5  ;;  %v521_v8 = vmul.f32 %v1676_v6, %v1672_v62 }
 0x56f   :  { %1543 = vmatpush3.bf16.xpose.msra.mxu1 %v630_v7  ;;  %1544 = vmatprep.mubr.msk.bf16.mxu1 %vm1798_vm1, %v1797_v10 }
 0x570   :  { %v523_v13 = vpack.c.bf16 %v521_v8, %v521_v8  ;;  %1554 = vmatprep.subr.bf16.mxu1 %v1797_v10 }
 0x572   :  { %1539 = vmatmul.mubr.msk.bf16.vlgmr.msra.gmra.mxu0 %vm278_vm7, %v523_v13 }
 0x573   :  { %1549 = vmatpush3.bf16.xpose.msra.mxu0 %v680_v14  ;;  %1550 = vmatprep.mubr.msk.bf16.mxu0 %vm1798_vm1, %v1797_v10 }
 0x574   :  { %1560 = vmatprep.subr.bf16.mxu0 %v1797_v10 }
 0x576   :  { %1545 = vmatmul.mubr.msk.bf16.vlgmr.msra.gmra.mxu1 %vm174_vm2, %v623_v15 }
 0x577   :  { %1556 = vmatprep.mubr.msk.bf16.mxu1 %vm1798_vm1, %v1797_v10 }
 0x57a   :  { %1551 = vmatmul.mubr.msk.bf16.vlgmr.msra.gmra.mxu0 %vm174_vm2, %v673_v16 }
 0x57b   :  { %1562 = vmatprep.mubr.msk.bf16.mxu0 %vm1798_vm1, %v1797_v10 }
 0x62e   :  { %v2021_v18 = vpop.f32.mrf.mxu1 }
 0x630   :  { %v1534_v19 = vpop.f32.mrf.mxu1 }
 0x632   :  { %v570_v22 = vpop.f32.mrf.mxu1  ;;  %v2023_v23 = vpop.f32.mrf.mxu0 }
 0x633   :  { %v1633_v25 = vpack.i.bf16 %v2023_v23, %v2021_v18 }
 0x634   :  { %v1535_v26 = vpop.f32.mrf.mxu1  ;;  %v1540_v28 = vpop.f32.mrf.mxu0 }
 0x636   :  { %v619_v30 = vpop.f32.mrf.mxu0  ;;  %v666_v31 = vpop.f32.mrf.mxu1 }
 0x637   :  { %v722_v33 = vsel %vm1937_vm6, -1e+09, %v666_v31 }
 0x638   :  { %v1541_v35 = vpop.f32.mrf.mxu0  ;;  %v1546_v37 = vpop.f32.mrf.mxu1  ;;  %v724_v38 = vsel %vm278_vm7, %v722_v33, -inf }
 0x639   :  { %725 = vmax.xlane.f32.xlu0 %v724_v38 }
 0x63a   :  { %v669_v39 = vpop.f32.mrf.mxu1  ;;  %v716_v40 = vpop.f32.mrf.mxu0 }
 0x63b   :  { %v723_v41 = vsel %vm1944_vm8, -1e+09, %v716_v40 }
 0x63c   :  { %v1547_v42 = vpop.f32.mrf.mxu1  ;;  %v1552_v43 = vpop.f32.mrf.mxu0  ;;  %v727_v45 = vsel %vm278_vm7, %v723_v41, -inf }
 0x63d   :  { %728 = vmax.xlane.f32.xlu1 %v727_v45 }
 0x63e   :  { %v719_v46 = vpop.f32.mrf.mxu0 }
 0x640   :  { %v1553_v47 = vpop.f32.mrf.mxu0 }
 0x64e   :  { %796 = vrot.lane.b32.xlu1 %v1917_v34, %s1802_s15 }
 0x64f   :  { %748 = vrot.lane.b32.xlu0 %v1911_v29, %s1802_s15 }
 0x652   :  { %846 = vrot.lane.b32.xlu1 %v1900_v17, %s1803_s16 }
 0x656   :  { %844 = vrot.lane.b32.xlu1 %v1914_v32, %s1804_s18 }
 0x6c2   :  { %v726_v48 = vpop.xlane.xlu0 %725 }
 0x6c3   :  { %v730_v50 = vsub.f32 %v722_v33, %v726_v48 }
 0x6c5   :  { %v732_v51 = vmul.f32 1.442695, %v730_v50 }
 0x6c6   :  { %v729_v52 = vpop.xlane.xlu1 %728  ;;  %v749_v53 = vpop.permute.xlu0 %748 }
 0x6c7   :  { %1677 = vpow2.f32 %v732_v51  ;;  %v731_v54 = vsub.f32 %v723_v41, %v729_v52  ;;  %v754_v55 = vsel %vm306_vm3, %v749_v53, 0 }
 0x6c8   :  { %1555 = vmatpush3.bf16.msra.mxu1 %v754_v55 }
 0x6c9   :  { %v734_v56 = vmul.f32 1.442695, %v731_v54  ;;  %1566 = vmatprep.subr.bf16.mxu1 %v1797_v10 }
 0x6ca   :  { %v797_v57 = vpop.permute.xlu1 %796 }
 0x6cb   :  { %1679 = vpow2.f32 %v734_v56  ;;  %v802_v17 = vsel %vm306_vm3, %v797_v57, 0 }
 0x6cc   :  { %1561 = vmatpush3.bf16.msra.mxu0 %v802_v17 }
 0x6cd   :  { %1572 = vmatprep.subr.bf16.mxu0 %v1797_v10 }
 0x6ce   :  { %v847_v1 = vpop.permute.xlu1 %846 }
 0x6cf   :  { %v852_v4 = vsel %vm174_vm2, %v847_v1, 0 }
 0x6d2   :  { %v845_v7 = vpop.permute.xlu1 %844 }
 0x6d4   :  { %v1678_v32 = vpop.eup %1677 }
 0x6d5   :  { %v736_v58 = vsel %vm278_vm7, %v1678_v32, 0.0 }
 0x6d6   :  { %737 = vadd.xlane.f32.xlu0 %v736_v58 }
 0x6d8   :  { %v1680_v59 = vpop.eup %1679 }
 0x6d9   :  { %v739_v60 = vsel %vm278_vm7, %v1680_v59, 0.0 }
 0x6da   :  { %740 = vadd.xlane.f32.xlu0 %v739_v60  ;;  %v1654_v60 = vld [vmem:[%s2167_s4 + $0x18] sm:$0xff]  }
 0x6f0   :  { %896 = vrot.lane.b32.xlu0 %v1903_v20, %s1803_s16 }
 0x6f4   :  { %894 = vrot.lane.b32.xlu0 %v1925_v36, %s1804_s18 }
 0x75f   :  { %v738_v61 = vpop.xlane.xlu0 %737 }
 0x760   :  { %1681 = vrcp.f32 %v738_v61  ;;  %v1655_v61 = vld [vmem:[%s2167_s4 + $0x10] sm:$0xff]  }
 0x763   :  { %v741_v62 = vpop.xlane.xlu0 %740 }
 0x764   :  { %1683 = vrcp.f32 %v741_v62  ;;  %v1656_v62 = vld [vmem:[%s2167_s4 + $0x8] sm:$0xff]  }
 0x767   :  { %v897_v6 = vpop.permute.xlu0 %896 }
 0x768   :  { %v902_v36 = vsel %vm174_vm2, %v897_v6, 0 }
 0x76b   :  { %v895_v8 = vpop.permute.xlu0 %894 }
 0x76d   :  { %v1682_v63 = vpop.eup %1681 }
 0x76e   :  { %v744_v0 = vmul.f32 %v1682_v63, %v1678_v32  ;;  %v1657_v63 = vld [vmem:[%s2167_s4] sm:$0xff]  }
 0x770   :  { %v746_v2 = vpack.c.bf16 %v744_v0, %v744_v0 }
 0x771   :  { %v1684_v3 = vpop.eup %1683 }
 0x772   :  { %1557 = vmatmul.mubr.msk.bf16.vlgmr.msra.gmra.mxu1 %vm278_vm7, %v746_v2  ;;  %v745_v5 = vmul.f32 %v1684_v3, %v1680_v59 }
 0x773   :  { %1567 = vmatpush3.bf16.xpose.msra.mxu1 %v852_v4  ;;  %1568 = vmatprep.mubr.msk.bf16.mxu1 %vm1798_vm1, %v1797_v10 }
 0x774   :  { %v747_v20 = vpack.c.bf16 %v745_v5, %v745_v5  ;;  %1578 = vmatprep.subr.bf16.mxu1 %v1797_v10 }
 0x776   :  { %1563 = vmatmul.mubr.msk.bf16.vlgmr.msra.gmra.mxu0 %vm278_vm7, %v747_v20 }
 0x777   :  { %1573 = vmatpush3.bf16.xpose.msra.mxu0 %v902_v36  ;;  %1574 = vmatprep.mubr.msk.bf16.mxu0 %vm1798_vm1, %v1797_v10 }
 0x778   :  { %1584 = vmatprep.subr.bf16.mxu0 %v1797_v10 }
 0x77a   :  { %1569 = vmatmul.mubr.msk.bf16.vlgmr.msra.gmra.mxu1 %vm174_vm2, %v845_v7 }
 0x77b   :  { %1580 = vmatprep.mubr.msk.bf16.mxu1 %vm1798_vm1, %v1797_v10 }
 0x77e   :  { %1575 = vmatmul.mubr.msk.bf16.vlgmr.msra.gmra.mxu0 %vm174_vm2, %v895_v8 }
 0x77f   :  { %1586 = vmatprep.mubr.msk.bf16.mxu0 %vm1798_vm1, %v1797_v10 }
 0x832   :  { %v790_v12 = vpop.f32.mrf.mxu1 }
 0x834   :  { %v1558_v13 = vpop.f32.mrf.mxu1 }
 0x836   :  { %v793_v14 = vpop.f32.mrf.mxu1  ;;  %v838_v15 = vpop.f32.mrf.mxu0 }
 0x837   :  { %v1638_v16 = vpack.i.bf16 %v838_v15, %v790_v12 }
 0x838   :  { %v1559_v19 = vpop.f32.mrf.mxu1  ;;  %v1564_v22 = vpop.f32.mrf.mxu0 }
 0x83a   :  { %v841_v26 = vpop.f32.mrf.mxu0  ;;  %v888_v28 = vpop.f32.mrf.mxu1 }
 0x83b   :  { %v944_v30 = vsel %vm1937_vm6, -1e+09, %v888_v28 }
 0x83c   :  { %v1565_v31 = vpop.f32.mrf.mxu0  ;;  %v1570_v33 = vpop.f32.mrf.mxu1  ;;  %v946_v35 = vsel %vm278_vm7, %v944_v30, -inf }
 0x83d   :  { %947 = vmax.xlane.f32.xlu1 %v946_v35 }
 0x83e   :  { %v891_v37 = vpop.f32.mrf.mxu1  ;;  %v938_v38 = vpop.f32.mrf.mxu0 }
 0x83f   :  { %v945_v39 = vsel %vm1944_vm8, -1e+09, %v938_v38  ;;  %v2116_v38 = vld [vmem:[#allocation7] sm:$0x3f] }
 0x840   :  { %v1571_v40 = vpop.f32.mrf.mxu1  ;;  %v1576_v41 = vpop.f32.mrf.mxu0  ;;  %v949_v42 = vsel %vm278_vm7, %v945_v39, -inf }
 0x841   :  { %950 = vmax.xlane.f32.xlu0 %v949_v42 }
 0x842   :  { %v941_v43 = vpop.f32.mrf.mxu0 }
 0x844   :  { %v1577_v45 = vpop.f32.mrf.mxu0 }
 0x8c6   :  { %v948_v46 = vpop.xlane.xlu1 %947 }
 0x8c7   :  { %v952_v44 = vsub.f32 %v944_v30, %v948_v46 }
 0x8c9   :  { %v954_v47 = vmul.f32 1.442695, %v952_v44 }
 0x8ca   :  { %v951_v48 = vpop.xlane.xlu0 %950 }
 0x8cb   :  { %1685 = vpow2.f32 %v954_v47  ;;  %v953_v50 = vsub.f32 %v945_v39, %v951_v48 }
 0x8cd   :  { %v956_v51 = vmul.f32 1.442695, %v953_v50 }
 0x8cf   :  { %1687 = vpow2.f32 %v956_v51 }
 0x8d8   :  { %v1686_v52 = vpop.eup %1685 }
 0x8d9   :  { %v958_v53 = vsel %vm278_vm7, %v1686_v52, 0.0 }
 0x8da   :  { %959 = vadd.xlane.f32.xlu0 %v958_v53 }
 0x8dc   :  { %v1688_v49 = vpop.eup %1687 }
 0x8dd   :  { %v961_v54 = vsel %vm278_vm7, %v1688_v49, 0.0 }
 0x8de   :  { %962 = vadd.xlane.f32.xlu1 %v961_v54 }
 0x8ef   :  { %1018 = vrot.lane.b32.xlu1 %v1917_v34, %s1804_s18 }
 0x8f0   :  { %970 = vrot.lane.b32.xlu0 %v1911_v29, %s1804_s18 }
 0x8f3   :  { %1634 = vrot.lane.b32.xlu1 %v1633_v25, %s1803_s16 }
 0x8f4   :  { %1639 = vrot.lane.b32.xlu0 %v1638_v16, %s1793_s17 }
 0x963   :  { %v960_v55 = vpop.xlane.xlu0 %959 }
 0x964   :  { %1689 = vrcp.f32 %v960_v55  ;;  %v1658_v55 = vld [vmem:[%s2168_s5 + $0x8] sm:$0xff]  }
 0x967   :  { %v971_v56 = vpop.permute.xlu0 %970  ;;  %v963_v57 = vpop.xlane.xlu1 %962 }
 0x968   :  { %v976_v17 = vsel %vm306_vm3, %v971_v56, 0  ;;  %1691 = vrcp.f32 %v963_v57  ;;  %v1659_v56 = vld [vmem:[%s2168_s5] sm:$0xff]  }
 0x969   :  { %1579 = vmatpush3.bf16.msra.mxu1 %v976_v17 }
 0x96a   :  { %1590 = vmatprep.subr.bf16.mxu1 %v1797_v10 }
 0x96b   :  { %v1019_v34 = vpop.permute.xlu1 %1018  ;;  %v1640_v13 = vpop.permute.xlu0 %1639 }
 0x96c   :  { %v1024_v29 = vsel %vm306_vm3, %v1019_v34, 0  ;;  %v1642_v16 = vunpack.i.h.bf16 %v1640_v13  ;;  %v1641_v19 = vunpack.i.l.bf16 %v1640_v13 }
 0x96d   :  { %1585 = vmatpush3.bf16.msra.mxu0 %v1024_v29 }
 0x96e   :  { %1602 = vmatprep.subr.bf16.mxu0 %v1797_v10 }
 0x96f   :  { %v1635_v7 = vpop.permute.xlu1 %1634 }
 0x970   :  { %v1637_v8 = vunpack.i.h.bf16 %v1635_v7  ;;  %v1636_v12 = vunpack.i.l.bf16 %v1635_v7 }
 0x971   :  { %v1690_v18 = vpop.eup %1689 }
 0x972   :  { %v966_v23 = vmul.f32 %v1690_v18, %v1686_v52  ;;  %v1091_v14 = vsel %vm174_vm2, %v1979_v27, %v1637_v8  ;;  %v1090_v15 = vsel %vm174_vm2, %v1977_v24, %v1636_v12  ;;  %v1110_v24 = vrot.slane %v2116_v38, %v84_v11 }
 0x973   :  { %v1092_v30 = vsel %vm112_vm0, %v1090_v15, %v1641_v19  ;;  %v1093_v31 = vsel %vm112_vm0, %v1091_v14, %v1642_v16 }
 0x974   :  { %v968_v25 = vpack.c.bf16 %v966_v23, %v966_v23 }
 0x975   :  { %v1692_v32 = vpop.eup %1691 }
 0x976   :  { %1581 = vmatmul.mubr.msk.bf16.vlgmr.msra.gmra.mxu1 %vm278_vm7, %v968_v25  ;;  %v967_v58 = vmul.f32 %v1692_v32, %v1688_v49  ;;  %v1210_v32 = vrot.slane %v2116_v38, %v88_v21  ;;  %v1660_v21 = vld [vmem:[%s2170_s7] sm:$0xff]  }
 0x977   :  { %1598 = vmatprep.mubr.msk.bf16.mxu1 %vm1798_vm1, %v1797_v10  ;;  %1591 = vmatpush3.bf16.msra.mxu1 %v1654_v60 }
 0x978   :  { %v969_v59 = vpack.c.bf16 %v967_v58, %v967_v58  ;;  %1592 = vmatprep.subr.bf16.mxu1 %v1797_v10 }
 0x97a   :  { %1587 = vmatmul.mubr.msk.bf16.vlgmr.msra.gmra.mxu0 %vm278_vm7, %v969_v59  ;;  %v1215_v59 = vsub.s32 2, %v1889_v9 }
 0x97b   :  { %1606 = vmatprep.mubr.msk.bf16.mxu0 %vm1798_vm1, %v1797_v10  ;;  %1593 = vmatpush3.bf16.msra.mxu1 %v1655_v61 }
 0x97c   :  { %1594 = vmatprep.subr.bf16.mxu1 %v1797_v10  ;;  %1603 = vmatpush3.bf16.msra.mxu0 %v1658_v55 }
 0x97d   :  { %1604 = vmatprep.subr.bf16.mxu0 %v1797_v10 }
 0x97f   :  { %1595 = vmatpush3.bf16.msra.mxu1 %v1656_v62 }
 0x980   :  { %1596 = vmatprep.subr.bf16.mxu1 %v1797_v10  ;;  %1605 = vmatpush3.bf16.msra.mxu0 %v1659_v56 }
 0x981   :  { %1610 = vmatprep.subr.bf16.mxu0 %v1797_v10 }
 0x983   :  { %1597 = vmatpush3.bf16.msra.mxu1 %v1657_v63  ;;  %v1216_v63 = vrot.slane %v2116_v38, %v1215_v59  ;;  %v1390_v59 = vsub.s32 4, %v1889_v9 }
 0xa36   :  { %v1012_v0 = vpop.f32.mrf.mxu1 }
 0xa38   :  { %v1582_v1 = vpop.f32.mrf.mxu1 }
 0xa3a   :  { %v1015_v2 = vpop.f32.mrf.mxu1  ;;  %v1060_v3 = vpop.f32.mrf.mxu0 }
 0xa3b   :  { %v1643_v4 = vpack.i.bf16 %v1060_v3, %v1012_v0 }
 0xa3c   :  { %v1583_v5 = vpop.f32.mrf.mxu1  ;;  %v1588_v6 = vpop.f32.mrf.mxu0 }
 0xa3d   :  { %1644 = vrot.lane.b32.xlu1 %v1643_v4, %s1800_s2  ;;  %v1446_v4 = vld [vmem:[%s2169_s6] ss:$0 sm:$0xff]  ;;  %s1805_s6 = smov [#allocation8]  }
 0xa3e   :  { %v1063_v20 = vpop.f32.mrf.mxu0  ;;  %s1407_s7 = sshll.u32 %s1805_s6, 4  ;;  %s1408_s7 = int_to_ptr.vmem [resolvable:$true] %s1407_s7 }
 0xa3f   :  { %s1765_s8 = scalar_lea.vmem %s1408_s7, 256  ;;  %p1770_p2 = scmp.lt.s32.totalorder %s1408_s7, %s1408_s7 }
 0xa40   :  { %v1589_v36 = vpop.f32.mrf.mxu0  ;;  %p1766_p1 = scmp.ne.s32.totalorder %s1408_s7, %s1765_s8  ;;  %p1771_p3 = scmp.lt.s32.totalorder %s1765_s8, %s1765_s8 }
 0xa42   :  { %p1772_p4 = por %p1771_p3, %p1770_p2 }
 0xa44   :  { %p1773_p5 = pnand %p1772_p4, %p1766_p1 }
 0xaaf   :  { %v1645_v22 = vpop.permute.xlu1 %1644 }
 0xab0   :  { %v1647_v26 = vunpack.i.h.bf16 %v1645_v22  ;;  %v1646_v28 = vunpack.i.l.bf16 %v1645_v22 }
 0xab2   :  { %v1096_v33 = vsel %vm1094_vm9, %v1093_v31, %v1647_v26  ;;  %v1095_v35 = vsel %vm1094_vm9, %v1092_v30, %v1646_v28 }
 0xab3   :  { %v1097_v37 = vpack.c.bf16 %v1096_v33, %v1095_v35 }
 0xab5   :  { %1599 = vmatmul.mubr.msk.bf16.vlgmr.msra.gmra.mxu1 %vm1135_vm10, %v1097_v37 }
 0xb75   :  { %v1173_v27 = vpop.f32.mrf.mxu1 }
 0xb76   :  { %v1174_v39 = vadd.f32 %v1173_v27, %v1110_v24 }
 0xb77   :  { %v1600_v40 = vpop.f32.mrf.mxu1 }
 0xb78   :  { %v1180_v41 = vsel %vm112_vm0, %v1174_v39, 0.0 }
 0xb79   :  { %1181 = vadd.xlane.f32.xlu0 %v1180_v41  ;;  %v1176_v42 = vpop.f32.mrf.mxu1  ;;  %v1310_v41 = vsub.s32 3, %v1889_v9 }
 0xb7a   :  { %v1177_v43 = vadd.f32 %v1176_v42, %v1110_v24 }
 0xb7b   :  { %v1601_v45 = vpop.f32.mrf.mxu1  ;;  %v1311_v42 = vrot.slane %v2116_v38, %v1310_v41 }
 0xb7c   :  { %v1183_v46 = vsel %vm112_vm0, %v1177_v43, 0.0 }
 0xb7d   :  { %1184 = vadd.xlane.f32.xlu1 %v1183_v46 }
 0xc02   :  { %v1182_v44 = vpop.xlane.xlu0 %1181 }
 0xc03   :  { %v1187_v47 = vmul.f32 0.03125, %v1182_v44 }
 0xc05   :  { %v1189_v48 = vsub.f32 %v1174_v39, %v1187_v47 }
 0xc06   :  { %v1185_v50 = vpop.xlane.xlu1 %1184 }
 0xc07   :  { %v1188_v51 = vmul.f32 0.03125, %v1185_v50  ;;  %v1191_v52 = vmul.f32 %v1189_v48, %v1189_v48 }
 0xc09   :  { %v1190_v53 = vsub.f32 %v1177_v43, %v1188_v51  ;;  %v1193_v11 = vsel %vm112_vm0, %v1191_v52, 0.0 }
 0xc0a   :  { %1194 = vadd.xlane.f32.xlu0 %v1193_v11 }
 0xc0b   :  { %v1192_v49 = vmul.f32 %v1190_v53, %v1190_v53 }
 0xc0d   :  { %v1196_v54 = vsel %vm112_vm0, %v1192_v49, 0.0 }
 0xc0e   :  { %1197 = vadd.xlane.f32.xlu0 %v1196_v54 }
 0xc93   :  { %v1195_v57 = vpop.xlane.xlu0 %1194 }
 0xc94   :  { %v1199_v17 = vmul.f32 0.03125, %v1195_v57 }
 0xc96   :  { %v1201_v34 = vadd.f32 1e-05, %v1199_v17 }
 0xc97   :  { %v1198_v29 = vpop.xlane.xlu0 %1197 }
 0xc98   :  { %1693 = vrsqrt.f32 %v1201_v34  ;;  %v1200_v18 = vmul.f32 0.03125, %v1198_v29 }
 0xc9a   :  { %v1202_v23 = vadd.f32 1e-05, %v1200_v18 }
 0xc9c   :  { %1695 = vrsqrt.f32 %v1202_v23 }
 0xca5   :  { %v1694_v25 = vpop.eup %1693 }
 0xca6   :  { %v1205_v58 = vmul.f32 %v1694_v25, %v1189_v48 }
 0xca8   :  { %v1211_v62 = vmul.f32 %v1210_v32, %v1205_v58 }
 0xca9   :  { %v1696_v60 = vpop.eup %1695 }
 0xcaa   :  { %v1206_v61 = vmul.f32 %v1696_v60, %v1190_v53  ;;  %v1217_v1 = vadd.f32 %v1216_v63, %v1211_v62  ;;  %v1396_v60 = vsub.s32 5, %v1889_v9 }
 0xcac   :  { %v1212_v0 = vmul.f32 %v1210_v32, %v1206_v61  ;;  %v1391_v61 = vrot.slane %v2116_v38, %v1390_v59 }
 0xcae   :  { %v1218_v2 = vadd.f32 %v1216_v63, %v1212_v0  ;;  %v1397_v0 = vrot.slane %v2116_v38, %v1396_v60 }
 0xcb0   :  { %v1219_v3 = vpack.c.bf16 %v1218_v2, %v1217_v1 }
 0xcb2   :  { %1607 = vmatmul.mubr.msk.bf16.vlgmr.msra.gmra.mxu0 %vm112_vm0, %v1219_v3 }
 0xcb3   :  { %1612 = vmatprep.mubr.msk.bf16.mxu0 %vm1798_vm1, %v1797_v10  ;;  %1611 = vmatpush3.bf16.msra.mxu0 %v1660_v21 }
 0xd72   :  { %v1280_v5 = vpop.f32.mrf.mxu0 }
 0xd73   :  { %v1281_v6 = vadd.f32 %v1446_v4, %v1280_v5 }
 0xd74   :  { %v1608_v20 = vpop.f32.mrf.mxu0 }
 0xd75   :  { %v1289_v36 = vmul.f32 %v1281_v6, %v1281_v6  ;;  %v1287_v35 = vmul.f32 0.5, %v1281_v6 }
 0xd76   :  { %v1283_v7 = vpop.f32.mrf.mxu0 }
 0xd77   :  { %v1291_v8 = vmul.f32 %v1289_v36, %v1281_v6  ;;  %v1284_v12 = vadd.f32 %v1446_v4, %v1283_v7 }
 0xd78   :  { %v1609_v13 = vpop.f32.mrf.mxu0 }
 0xd79   :  { %v1293_v14 = vmul.f32 0.044715, %v1291_v8  ;;  %v1290_v15 = vmul.f32 %v1284_v12, %v1284_v12  ;;  %v1288_v37 = vmul.f32 0.5, %v1284_v12 }
 0xd7b   :  { %v1295_v10 = vadd.f32 %v1293_v14, %v1281_v6  ;;  %v1292_v16 = vmul.f32 %v1290_v15, %v1284_v12 }
 0xd7d   :  { %v1297_v19 = vmul.f32 0.7978846, %v1295_v10  ;;  %v1294_v22 = vmul.f32 0.044715, %v1292_v16 }
 0xd7f   :  { %1697 = vtanh.f32 %v1297_v19  ;;  %v1296_v26 = vadd.f32 %v1294_v22, %v1284_v12 }
 0xd81   :  { %v1298_v28 = vmul.f32 0.7978846, %v1296_v26 }
 0xd83   :  { %1699 = vtanh.f32 %v1298_v28 }
 0xd8c   :  { %v1698_v30 = vpop.eup %1697 }
 0xd8d   :  { %v1301_v31 = vadd.f32 1.0, %v1698_v30 }
 0xd8f   :  { %v1303_v27 = vmul.f32 %v1301_v31, %v1287_v35 }
 0xd90   :  { %v1700_v33 = vpop.eup %1699 }
 0xd91   :  { %v1302_v24 = vadd.f32 1.0, %v1700_v33 }
 0xd93   :  { %v1304_v39 = vmul.f32 %v1302_v24, %v1288_v37 }
 0xd95   :  { %v1305_v40 = vpack.c.bf16 %v1304_v39, %v1303_v27 }
 0xd97   :  { %1613 = vmatmul.mubr.msk.bf16.vlgmr.msra.gmra.mxu0 %vm174_vm2, %v1305_v40 }
 0xe57   :  { %v1355_v43 = vpop.f32.mrf.mxu0 }
 0xe58   :  { %v1356_v45 = vadd.f32 %v1355_v43, %v1311_v42 }
 0xe59   :  { %v1614_v46 = vpop.f32.mrf.mxu0 }
 0xe5a   :  { %v1362_v44 = vsel %vm112_vm0, %v1356_v45, 0.0 }
 0xe5b   :  { %1363 = vadd.xlane.f32.xlu1 %v1362_v44  ;;  %v1358_v47 = vpop.f32.mrf.mxu0 }
 0xe5c   :  { %v1359_v48 = vadd.f32 %v1358_v47, %v1311_v42 }
 0xe5d   :  { %v1615_v50 = vpop.f32.mrf.mxu0 }
 0xe5e   :  { %v1365_v51 = vsel %vm112_vm0, %v1359_v48, 0.0 }
 0xe5f   :  { %1366 = vadd.xlane.f32.xlu0 %v1365_v51 }
 0xee4   :  { %v1364_v52 = vpop.xlane.xlu1 %1363 }
 0xee5   :  { %v1368_v53 = vmul.f32 0.03125, %v1364_v52 }
 0xee7   :  { %v1370_v11 = vsub.f32 %v1356_v45, %v1368_v53 }
 0xee8   :  { %v1367_v49 = vpop.xlane.xlu0 %1366 }
 0xee9   :  { %v1369_v54 = vmul.f32 0.03125, %v1367_v49  ;;  %v1372_v55 = vmul.f32 %v1370_v11, %v1370_v11 }
 0xeeb   :  { %v1371_v56 = vsub.f32 %v1359_v48, %v1369_v54  ;;  %v1374_v57 = vsel %vm112_vm0, %v1372_v55, 0.0 }
 0xeec   :  { %1375 = vadd.xlane.f32.xlu1 %v1374_v57 }
 0xeed   :  { %v1373_v17 = vmul.f32 %v1371_v56, %v1371_v56 }
 0xeef   :  { %v1377_v34 = vsel %vm112_vm0, %v1373_v17, 0.0 }
 0xef0   :  { %1378 = vadd.xlane.f32.xlu0 %v1377_v34 }
 0xf75   :  { %v1376_v29 = vpop.xlane.xlu1 %1375 }
 0xf76   :  { %v1380_v18 = vmul.f32 0.03125, %v1376_v29 }
 0xf78   :  { %v1382_v23 = vadd.f32 1e-05, %v1380_v18 }
 0xf79   :  { %v1379_v25 = vpop.xlane.xlu0 %1378 }
 0xf7a   :  { %1701 = vrsqrt.f32 %v1382_v23  ;;  %v1381_v32 = vmul.f32 0.03125, %v1379_v25 }
 0xf7c   :  { %v1383_v58 = vadd.f32 1e-05, %v1381_v32 }
 0xf7e   :  { %1703 = vrsqrt.f32 %v1383_v58 }
 0xf87   :  { %v1702_v62 = vpop.eup %1701 }
 0xf88   :  { %v1386_v63 = vmul.f32 %v1702_v62, %v1370_v11 }
 0xf8a   :  { %v1392_v1 = vmul.f32 %v1391_v61, %v1386_v63 }
 0xf8b   :  { %v1704_v2 = vpop.eup %1703 }
 0xf8c   :  { %v1387_v3 = vmul.f32 %v1704_v2, %v1371_v56  ;;  %v1398_v21 = vadd.f32 %v1397_v0, %v1392_v1 }
 0xf8e   :  { %v1393_v4 = vmul.f32 %v1391_v61, %v1387_v3  ;;  %1400 = vst.msk [vmem:[#allocation8] sm:$0xff] %vm112_vm0, %v1398_v21 }
 0xf90   :  { %v1399_v5 = vadd.f32 %v1397_v0, %v1393_v4 }
 0xf92   :  { %1401 = vst.msk [vmem:[#allocation8 + $0x8] sm:$0xff] %vm112_vm0, %v1399_v5 }
 0xf93   :  { %1776 = shalt.err (!%p1773_p5)
}
 0xf94   :  { %s1806_s30 = smov 128   ;;  %s1807_s10 = smov 8  }
 0xf95   :  { %1413 = dma.vmem_to_hbm [thread:$0]  %s1408_s7, 256, %s2172_s9, [#allocation4], %s1806_s30, %s1806_s30, %s1807_s10  }
 0xf96   :  { %1789 = dma.done.wait [#allocation4], 256  }
 0xf97   :  { %1790 = vsyncadd [#allocation4], 4294967040 }
 0xf98   :  { %1417 = vsyncpa [#allocation3], 1 }
 0xf99   :  { %1418 = vsyncpa [#allocation6], 1 }
 0xf9a   :  { %1419 = vsyncpa [#allocation4], 1 }

</bundles_post_ra>
